<compile_context>
chip_gen: v5e
topology: v5e:2x2
jax: 0.10.0
libtpu: 0.0.40
codegen_flags: <defaults>
</compile_context>

<pallas_src>
import functools

import jax
import jax.numpy as jnp
from jax.experimental import pallas as pl
from jax.experimental.pallas import tpu as pltpu


def _ae_kernel(x_ref,
               we1_ref, be1_ref,
               we3_ref, be3_ref,
               wd1_ref, bd1_ref,
               wd3_ref, bd3_ref,
               wp_ref, bp_ref,
               out_ref, lat_ref, pred_ref):
    """Fused autoencoder + prediction-head forward for one batch tile.

    Matmul operands are in the (possibly bf16) streaming dtype of the weights;
    all accumulation, bias adds and activations are in f32.
    """
    cd = we1_ref.dtype                       # streaming / MXU-input dtype
    x = x_ref[...].astype(cd)                # in-kernel cast: no extra HBM pass

    # Encoder: input_size -> hidden -> latent
    h1 = jnp.tanh(
        jnp.dot(x, we1_ref[...], preferred_element_type=jnp.float32)
        + be1_ref[...])
    latent = (jnp.dot(h1.astype(cd), we3_ref[...],
                      preferred_element_type=jnp.float32)
              + be3_ref[...])

    # Decoder: latent -> hidden -> input_size
    d1 = jnp.tanh(
        jnp.dot(latent.astype(cd), wd1_ref[...],
                preferred_element_type=jnp.float32)
        + bd1_ref[...])
    out = (jnp.dot(d1.astype(cd), wd3_ref[...],
                   preferred_element_type=jnp.float32)
           + bd3_ref[...])

    # Prediction head: latent -> 1, sigmoid.  Wp is stored as a [1, latent]
    # row, so this is a broadcast-multiply + lane reduction (VPU + XLU); the
    # 1-lane masked store is negligible next to the 2.5 KB/row other outputs
    # and saves a separate XLA launch that would re-read `latent` from HBM.
    logits = (jnp.sum(latent * wp_ref[...], axis=-1, keepdims=True)
              + bp_ref[...])
    pred = 1.0 / (1.0 + jnp.exp(-logits))

    out_ref[...] = out.astype(out_ref.dtype)
    lat_ref[...] = latent.astype(lat_ref.dtype)
    pred_ref[...] = pred.astype(pred_ref.dtype)


def _tpu_topology():
    """(per-core VMEM capacity bytes, # TensorCores); conservative fallbacks."""
    vmem_cap = 64 * 1024 * 1024          # v7x-safe default
    n_cores = 1
    try:
        info = pltpu.get_tpu_info()
        vmem_cap = int(getattr(info, "vmem_capacity_bytes", vmem_cap))
        for attr in ("num_cores", "tensorcore_count", "core_count"):
            v = getattr(info, attr, None)
            if v:
                n_cores = int(v)
                break
    except Exception:
        pass
    return vmem_cap, n_cores


def prepare_params(params, compute_dtype=jnp.bfloat16):
    """One-time parameter preparation (call once, reuse for every forward):
      * the four streaming weight matrices are cast to `compute_dtype`,
      * biases stay f32 (added to the f32 MXU accumulator),
      * the prediction head is stored as a [1, latent_size] f32 row so the
        kernel can compute it as a broadcast-multiply + lane reduction."""
    f32 = jnp.float32
    return {
        "we1": params["we1"].astype(compute_dtype),
        "we3": params["we3"].astype(compute_dtype),
        "wd1": params["wd1"].astype(compute_dtype),
        "wd3": params["wd3"].astype(compute_dtype),
        "be1": params["be1"].astype(f32),
        "be3": params["be3"].astype(f32),
        "bd1": params["bd1"].astype(f32),
        "bd3": params["bd3"].astype(f32),
        "wp": jnp.transpose(params["wp"].astype(f32)),   # [1, latent_size]
        "bp": params["bp"].astype(f32),                  # [1, 1]
    }


@functools.partial(jax.jit, static_argnames=("block_b", "out_dtype"))
def ae_prednet_forward(x, params, *, block_b=1024, out_dtype=jnp.float32):
    """Runs the fused AEPredNet forward pass (eval mode).

    x: [B, input_size] float32.
    params: output of prepare_params().
    Returns (out [B, input_size] out_dtype, latent [B, latent_size] f32,
             pred [B] f32).
    """
    B, input_size = x.shape
    hidden = params["we1"].shape[1]
    latent_size = params["we3"].shape[1]
    compute_dtype = params["we1"].dtype
    itemsize = jnp.dtype(compute_dtype).itemsize
    out_itemsize = jnp.dtype(out_dtype).itemsize

    vmem_cap, n_cores = _tpu_topology()

    # ---- batch tile: as big as B allows (the kernel is HBM-bound; big tiles
    # ---- amortize the ~0.35 us per-grid-step overhead).  On multi-TC chips
    # ---- (v7x) guarantee >= 2 grid steps so both cores get work.
    mult = 16 if itemsize < 4 else 8       # keep sublane-packed vregs full
    bb = min(block_b, B)
    if n_cores >= 2 and B >= 2 * mult:
        bb = min(bb, pl.cdiv(B, 2))
    if bb < B:
        bb = max(mult, (bb // mult) * mult)
    b_padded = pl.cdiv(B, bb) * bb
    x_in = x if b_padded == B else jnp.pad(x, ((0, b_padded - B), (0, 0)))
    grid = (b_padded // bb,)

    def rep(shape):
        # Replicated (grid-invariant) parameter block.
        return pl.BlockSpec(shape, lambda i: (0, 0))

    out_shapes = (
        jax.ShapeDtypeStruct((b_padded, input_size), out_dtype),
        jax.ShapeDtypeStruct((b_padded, latent_size), jnp.float32),
        jax.ShapeDtypeStruct((b_padded, 1), jnp.float32),
    )

    # ---- VMEM budget: raise the scoped limit only when the tile demands it,
    # ---- and never ask for more than ~85% of physical per-core VMEM.
    weight_bytes = (input_size * hidden + hidden * latent_size
                    + latent_size * hidden + hidden * input_size) * itemsize
    bias_bytes = (2 * hidden + 2 * latent_size + input_size + 2) * 4
    block_bytes = (bb * input_size * 4                # x tile (f32)
                   + bb * input_size * out_itemsize   # out tile
                   + bb * latent_size * 4             # latent tile
                   + bb * 4)                          # pred tile
    est_vmem = 2 * (weight_bytes + bias_bytes + block_bytes)   # double-buffered
    cp_kwargs = dict(dimension_semantics=("parallel",))
    if est_vmem > 12 * 1024 * 1024:
        cp_kwargs["vmem_limit_bytes"] = min(
            int(est_vmem * 1.5) + (2 << 20), int(vmem_cap * 0.85))

    out, latent, pred2d = pl.pallas_call(
        _ae_kernel,
        out_shape=out_shapes,
        grid_spec=pltpu.PrefetchScalarGridSpec(
            num_scalar_prefetch=0,
            grid=grid,
            in_specs=[
                pl.BlockSpec((bb, input_size), lambda i: (i, 0)),   # x (f32)
                rep((input_size, hidden)),       # We1
                rep((1, hidden)),                # be1
                rep((hidden, latent_size)),      # We3
                rep((1, latent_size)),           # be3
                rep((latent_size, hidden)),      # Wd1
                rep((1, hidden)),                # bd1
                rep((hidden, input_size)),       # Wd3
                rep((1, input_size)),            # bd3
                rep((1, latent_size)),           # Wp (row layout)
                rep((1, 1)),                     # bp
            ],
            out_specs=[
                pl.BlockSpec((bb, input_size), lambda i: (i, 0)),
                pl.BlockSpec((bb, latent_size), lambda i: (i, 0)),
                pl.BlockSpec((bb, 1), lambda i: (i, 0)),
            ],
        ),
        compiler_params=pltpu.CompilerParams(**cp_kwargs),
    )(x_in, params["we1"], params["be1"], params["we3"], params["be3"],
      params["wd1"], params["bd1"], params["wd3"], params["bd3"],
      params["wp"], params["bp"])

    if b_padded != B:
        out = out[:B]
        latent = latent[:B]
        pred2d = pred2d[:B]

    # TODO(synk): PyTorch's .squeeze() returns a 0-d scalar for B == 1; here
    #             pred is always shape (B,).
    return out, latent, pred2d[:, 0]


def init_params(key, input_size=512, latent_size=128):
    """Deterministic nn.Linear-style init: U(-1/sqrt(fan_in), 1/sqrt(fan_in)).

    Weights stored as [in, out] (transpose of PyTorch layout)."""
    hidden = input_size // 4

    def linear(key, fan_in, fan_out):
        kw, kb = jax.random.split(key)
        bound = 1.0 / jnp.sqrt(float(fan_in))
        w = jax.random.uniform(kw, (fan_in, fan_out), jnp.float32,
                               minval=-bound, maxval=bound)
        b = jax.random.uniform(kb, (1, fan_out), jnp.float32,
                               minval=-bound, maxval=bound)
        return w, b

    keys = jax.random.split(key, 5)
    we1, be1 = linear(keys[0], input_size, hidden)      # fc_e1
    we3, be3 = linear(keys[1], hidden, latent_size)     # fc_e3
    wd1, bd1 = linear(keys[2], latent_size, hidden)     # fc_d1
    wd3, bd3 = linear(keys[3], hidden, input_size)      # fc_d3
    wp, bp = linear(keys[4], latent_size, 1)            # prediction
    return dict(we1=we1, be1=be1, we3=we3, be3=be3,
                wd1=wd1, bd1=bd1, wd3=wd3, bd3=bd3,
                wp=wp, bp=bp)


def ae_prednet_reference(x, p, compute_dtype=jnp.bfloat16):
    """Pure-JAX reference of the eval-mode forward pass, with the same
    streaming-dtype casts as the kernel (apples-to-apples comparison)."""
    cd = compute_dtype
    f32 = jnp.float32
    h1 = jnp.tanh(jnp.dot(x.astype(cd), p["we1"].astype(cd),
                          preferred_element_type=f32) + p["be1"])
    latent = jnp.dot(h1.astype(cd), p["we3"].astype(cd),
                     preferred_element_type=f32) + p["be3"]
    d1 = jnp.tanh(jnp.dot(latent.astype(cd), p["wd1"].astype(cd),
                          preferred_element_type=f32) + p["bd1"])
    out = jnp.dot(d1.astype(cd), p["wd3"].astype(cd),
                  preferred_element_type=f32) + p["bd3"]
    pred = jax.nn.sigmoid((latent @ p["wp"] + p["bp"])[:, 0])
    return out, latent, pred


if __name__ == "__main__":
    INPUT_SIZE = 512
    LATENT_SIZE = 128

    key = jax.random.PRNGKey(0)
    k_x, k_p = jax.random.split(key)
    params = init_params(k_p, INPUT_SIZE, LATENT_SIZE)              # f32
    prepared = prepare_params(params, compute_dtype=jnp.bfloat16)   # once

    # Case 1: default (large) tile — single step on 1-TC chips, >=2 on v7x.
    x = jax.random.normal(k_x, (64, INPUT_SIZE), jnp.float32)
    out, latent, pred = ae_prednet_forward(x, prepared)
    jax.block_until_ready((out, latent, pred))
    out_r, latent_r, pred_r = ae_prednet_reference(x, params)
    assert out.shape == (64, INPUT_SIZE)
    assert latent.shape == (64, LATENT_SIZE)
    assert pred.shape == (64,)
    assert jnp.allclose(out, out_r, atol=1e-3, rtol=1e-3)
    assert jnp.allclose(latent, latent_r, atol=1e-3, rtol=1e-3)
    assert jnp.allclose(pred, pred_r, atol=1e-3, rtol=1e-3)

    # Case 2: small tile -> multi-step grid (exercises tiling / pipelining).
    out2, latent2, pred2 = ae_prednet_forward(x, prepared, block_b=16)
    jax.block_until_ready((out2, latent2, pred2))
    assert jnp.allclose(out2, out_r, atol=1e-3, rtol=1e-3)
    assert jnp.allclose(latent2, latent_r, atol=1e-3, rtol=1e-3)
    assert jnp.allclose(pred2, pred_r, atol=1e-3, rtol=1e-3)

    # Case 3: batch not divisible by the tile (exercises the padding path).
    x3 = x[:20]
    out3, latent3, pred3 = ae_prednet_forward(x3, prepared, block_b=16)
    jax.block_until_ready((out3, latent3, pred3))
    out3_r, latent3_r, pred3_r = ae_prednet_reference(x3, params)
    assert out3.shape == (20, INPUT_SIZE) and pred3.shape == (20,)
    assert jnp.allclose(out3, out3_r, atol=1e-3, rtol=1e-3)
    assert jnp.allclose(latent3, latent3_r, atol=1e-3, rtol=1e-3)
    assert jnp.allclose(pred3, pred3_r, atol=1e-3, rtol=1e-3)

    # Case 4: optional bf16 reconstruction output (halves the largest HBM
    # stream); latent / pred remain f32.
    out4, latent4, pred4 = ae_prednet_forward(x, prepared,
                                              out_dtype=jnp.bfloat16)
    jax.block_until_ready((out4, latent4, pred4))
    assert out4.dtype == jnp.bfloat16
    assert jnp.allclose(out4.astype(jnp.float32), out_r, atol=3e-2, rtol=3e-2)
    assert jnp.allclose(pred4, pred_r, atol=1e-3, rtol=1e-3)

    print("KERNEL_OK")
</pallas_src>

<mosaic_0001>
module attributes {stable_mosaic.version = 11 : i64} {
  func.func @_ae_kernel(%arg0: i32, %arg1: memref<64x512xf32, #tpu.memory_space<vmem>>, %arg2: memref<512x128xbf16, #tpu.memory_space<vmem>>, %arg3: memref<1x128xf32, #tpu.memory_space<vmem>>, %arg4: memref<128x128xbf16, #tpu.memory_space<vmem>>, %arg5: memref<1x128xf32, #tpu.memory_space<vmem>>, %arg6: memref<128x128xbf16, #tpu.memory_space<vmem>>, %arg7: memref<1x128xf32, #tpu.memory_space<vmem>>, %arg8: memref<128x512xbf16, #tpu.memory_space<vmem>>, %arg9: memref<1x512xf32, #tpu.memory_space<vmem>>, %arg10: memref<1x128xf32, #tpu.memory_space<vmem>>, %arg11: memref<1x1xf32, #tpu.memory_space<vmem>>, %arg12: memref<64x512xf32, #tpu.memory_space<vmem>>, %arg13: memref<64x128xf32, #tpu.memory_space<vmem>>, %arg14: memref<64x1xf32, #tpu.memory_space<vmem>>) attributes {dimension_semantics = [#tpu.dimension_semantics<parallel>], iteration_bounds = array<i64: 1>, scalar_prefetch = 0 : i64, scratch_operands = 0 : i64, tpu.core_type = #tpu.core_type<tc>, window_params = [{transform_indices = @transform_0, window_bounds = array<i64: 64, 512>}, {pipeline_mode = #tpu.pipeline_mode<synchronous>, transform_indices = @transform_1, window_bounds = array<i64: 512, 128>}, {pipeline_mode = #tpu.pipeline_mode<synchronous>, transform_indices = @transform_2, window_bounds = array<i64: 1, 128>}, {pipeline_mode = #tpu.pipeline_mode<synchronous>, transform_indices = @transform_3, window_bounds = array<i64: 128, 128>}, {pipeline_mode = #tpu.pipeline_mode<synchronous>, transform_indices = @transform_4, window_bounds = array<i64: 1, 128>}, {pipeline_mode = #tpu.pipeline_mode<synchronous>, transform_indices = @transform_5, window_bounds = array<i64: 128, 128>}, {pipeline_mode = #tpu.pipeline_mode<synchronous>, transform_indices = @transform_6, window_bounds = array<i64: 1, 128>}, {pipeline_mode = #tpu.pipeline_mode<synchronous>, transform_indices = @transform_7, window_bounds = array<i64: 128, 512>}, {pipeline_mode = #tpu.pipeline_mode<synchronous>, transform_indices = @transform_8, window_bounds = array<i64: 1, 512>}, {pipeline_mode = #tpu.pipeline_mode<synchronous>, transform_indices = @transform_9, window_bounds = array<i64: 1, 128>}, {pipeline_mode = #tpu.pipeline_mode<synchronous>, transform_indices = @transform_10, window_bounds = array<i64: 1, 1>}, {transform_indices = @transform_11, window_bounds = array<i64: 64, 512>}, {transform_indices = @transform_12, window_bounds = array<i64: 64, 128>}, {transform_indices = @transform_13, window_bounds = array<i64: 64, 1>}]} {
    %c0 = arith.constant 0 : index
    %c0_0 = arith.constant 0 : index
    %0 = vector.load %arg1[%c0, %c0_0] : memref<64x512xf32, #tpu.memory_space<vmem>>, vector<64x512xf32>
    %1 = arith.truncf %0 : vector<64x512xf32> to vector<64x512xbf16>
    %c0_1 = arith.constant 0 : index
    %c0_2 = arith.constant 0 : index
    %2 = vector.load %arg2[%c0_1, %c0_2] : memref<512x128xbf16, #tpu.memory_space<vmem>>, vector<512x128xbf16>
    %cst = arith.constant dense<0.000000e+00> : vector<64x128xf32>
    %3 = tpu.matmul %1, %2, %cst {dimension_numbers = #tpu.dot_dimension_numbers<[1], [0], [0], [1], [0, 0, 1, 1], [], []>} : vector<64x512xbf16>, vector<512x128xbf16>, vector<64x128xf32> -> vector<64x128xf32>
    %c0_3 = arith.constant 0 : index
    %c0_4 = arith.constant 0 : index
    %4 = vector.load %arg3[%c0_3, %c0_4] : memref<1x128xf32, #tpu.memory_space<vmem>>, vector<1x128xf32>
    %5 = vector.broadcast %4 : vector<1x128xf32> to vector<64x128xf32>
    %6 = arith.addf %3, %5 : vector<64x128xf32>
    %7 = math.tanh %6 : vector<64x128xf32>
    %8 = arith.truncf %7 : vector<64x128xf32> to vector<64x128xbf16>
    %c0_5 = arith.constant 0 : index
    %c0_6 = arith.constant 0 : index
    %9 = vector.load %arg4[%c0_5, %c0_6] : memref<128x128xbf16, #tpu.memory_space<vmem>>, vector<128x128xbf16>
    %cst_7 = arith.constant dense<0.000000e+00> : vector<64x128xf32>
    %10 = tpu.matmul %8, %9, %cst_7 {dimension_numbers = #tpu.dot_dimension_numbers<[1], [0], [0], [1], [0, 0, 1, 1], [], []>} : vector<64x128xbf16>, vector<128x128xbf16>, vector<64x128xf32> -> vector<64x128xf32>
    %c0_8 = arith.constant 0 : index
    %c0_9 = arith.constant 0 : index
    %11 = vector.load %arg5[%c0_8, %c0_9] : memref<1x128xf32, #tpu.memory_space<vmem>>, vector<1x128xf32>
    %12 = vector.broadcast %11 : vector<1x128xf32> to vector<64x128xf32>
    %13 = arith.addf %10, %12 : vector<64x128xf32>
    %14 = arith.truncf %13 : vector<64x128xf32> to vector<64x128xbf16>
    %c0_10 = arith.constant 0 : index
    %c0_11 = arith.constant 0 : index
    %15 = vector.load %arg6[%c0_10, %c0_11] : memref<128x128xbf16, #tpu.memory_space<vmem>>, vector<128x128xbf16>
    %cst_12 = arith.constant dense<0.000000e+00> : vector<64x128xf32>
    %16 = tpu.matmul %14, %15, %cst_12 {dimension_numbers = #tpu.dot_dimension_numbers<[1], [0], [0], [1], [0, 0, 1, 1], [], []>} : vector<64x128xbf16>, vector<128x128xbf16>, vector<64x128xf32> -> vector<64x128xf32>
    %c0_13 = arith.constant 0 : index
    %c0_14 = arith.constant 0 : index
    %17 = vector.load %arg7[%c0_13, %c0_14] : memref<1x128xf32, #tpu.memory_space<vmem>>, vector<1x128xf32>
    %18 = vector.broadcast %17 : vector<1x128xf32> to vector<64x128xf32>
    %19 = arith.addf %16, %18 : vector<64x128xf32>
    %20 = math.tanh %19 : vector<64x128xf32>
    %21 = arith.truncf %20 : vector<64x128xf32> to vector<64x128xbf16>
    %c0_15 = arith.constant 0 : index
    %c0_16 = arith.constant 0 : index
    %22 = vector.load %arg8[%c0_15, %c0_16] : memref<128x512xbf16, #tpu.memory_space<vmem>>, vector<128x512xbf16>
    %cst_17 = arith.constant dense<0.000000e+00> : vector<64x512xf32>
    %23 = tpu.matmul %21, %22, %cst_17 {dimension_numbers = #tpu.dot_dimension_numbers<[1], [0], [0], [1], [0, 0, 1, 1], [], []>} : vector<64x128xbf16>, vector<128x512xbf16>, vector<64x512xf32> -> vector<64x512xf32>
    %c0_18 = arith.constant 0 : index
    %c0_19 = arith.constant 0 : index
    %24 = vector.load %arg9[%c0_18, %c0_19] : memref<1x512xf32, #tpu.memory_space<vmem>>, vector<1x512xf32>
    %25 = vector.broadcast %24 : vector<1x512xf32> to vector<64x512xf32>
    %26 = arith.addf %23, %25 : vector<64x512xf32>
    %c0_20 = arith.constant 0 : index
    %c0_21 = arith.constant 0 : index
    %27 = vector.load %arg10[%c0_20, %c0_21] : memref<1x128xf32, #tpu.memory_space<vmem>>, vector<1x128xf32>
    %28 = vector.broadcast %27 : vector<1x128xf32> to vector<64x128xf32>
    %29 = arith.mulf %13, %28 : vector<64x128xf32>
    %cst_22 = arith.constant dense<0.000000e+00> : vector<64xf32>
    %30 = vector.multi_reduction <add>, %29, %cst_22 [1] : vector<64x128xf32> to vector<64xf32>
    %31 = vector.shape_cast %30 : vector<64xf32> to vector<64x1xf32>
    %c0_23 = arith.constant 0 : index
    %c0_24 = arith.constant 0 : index
    %32 = vector.load %arg11[%c0_23, %c0_24] : memref<1x1xf32, #tpu.memory_space<vmem>>, vector<1x1xf32>
    %33 = vector.broadcast %32 : vector<1x1xf32> to vector<64x1xf32>
    %34 = arith.addf %31, %33 : vector<64x1xf32>
    %cst_25 = arith.constant 0.000000e+00 : f32
    %35 = vector.broadcast %cst_25 : f32 to vector<64x1xf32>
    %36 = arith.subf %35, %34 : vector<64x1xf32>
    %37 = math.exp %36 : vector<64x1xf32>
    %cst_26 = arith.constant 1.000000e+00 : f32
    %38 = vector.broadcast %cst_26 : f32 to vector<64x1xf32>
    %39 = arith.addf %38, %37 : vector<64x1xf32>
    %cst_27 = arith.constant 1.000000e+00 : f32
    %40 = vector.broadcast %cst_27 : f32 to vector<64x1xf32>
    %41 = arith.divf %40, %39 : vector<64x1xf32>
    %c0_28 = arith.constant 0 : index
    %c0_29 = arith.constant 0 : index
    %42 = vector.load %arg12[%c0_28, %c0_29] : memref<64x512xf32, #tpu.memory_space<vmem>>, vector<64x512xf32>
    tpu.vector_store %arg12[%c0_28, %c0_29], %26 {strides = array<i32>} : memref<64x512xf32, #tpu.memory_space<vmem>>, vector<64x512xf32>,
    %c0_30 = arith.constant 0 : index
    %c0_31 = arith.constant 0 : index
    %43 = vector.load %arg13[%c0_30, %c0_31] : memref<64x128xf32, #tpu.memory_space<vmem>>, vector<64x128xf32>
    tpu.vector_store %arg13[%c0_30, %c0_31], %13 {strides = array<i32>} : memref<64x128xf32, #tpu.memory_space<vmem>>, vector<64x128xf32>,
    %c0_32 = arith.constant 0 : index
    %c0_33 = arith.constant 0 : index
    %44 = vector.load %arg14[%c0_32, %c0_33] : memref<64x1xf32, #tpu.memory_space<vmem>>, vector<64x1xf32>
    tpu.vector_store %arg14[%c0_32, %c0_33], %41 {strides = array<i32>} : memref<64x1xf32, #tpu.memory_space<vmem>>, vector<64x1xf32>,
    return
  }
  func.func @transform_0(%arg0: i32) -> (i32, i32) {
    %c0_i32 = arith.constant 0 : i32
    %c0_i32_0 = arith.constant 0 : i32
    return %arg0, %c0_i32 : i32, i32
  }
  func.func @transform_1(%arg0: i32) -> (i32, i32) {
    %c0_i32 = arith.constant 0 : i32
    %c0_i32_0 = arith.constant 0 : i32
    %c0_i32_1 = arith.constant 0 : i32
    return %c0_i32, %c0_i32_0 : i32, i32
  }
  func.func @transform_2(%arg0: i32) -> (i32, i32) {
    %c0_i32 = arith.constant 0 : i32
    %c0_i32_0 = arith.constant 0 : i32
    %c0_i32_1 = arith.constant 0 : i32
    return %c0_i32, %c0_i32_0 : i32, i32
  }
  func.func @transform_3(%arg0: i32) -> (i32, i32) {
    %c0_i32 = arith.constant 0 : i32
    %c0_i32_0 = arith.constant 0 : i32
    %c0_i32_1 = arith.constant 0 : i32
    return %c0_i32, %c0_i32_0 : i32, i32
  }
  func.func @transform_4(%arg0: i32) -> (i32, i32) {
    %c0_i32 = arith.constant 0 : i32
    %c0_i32_0 = arith.constant 0 : i32
    %c0_i32_1 = arith.constant 0 : i32
    return %c0_i32, %c0_i32_0 : i32, i32
  }
  func.func @transform_5(%arg0: i32) -> (i32, i32) {
    %c0_i32 = arith.constant 0 : i32
    %c0_i32_0 = arith.constant 0 : i32
    %c0_i32_1 = arith.constant 0 : i32
    return %c0_i32, %c0_i32_0 : i32, i32
  }
  func.func @transform_6(%arg0: i32) -> (i32, i32) {
    %c0_i32 = arith.constant 0 : i32
    %c0_i32_0 = arith.constant 0 : i32
    %c0_i32_1 = arith.constant 0 : i32
    return %c0_i32, %c0_i32_0 : i32, i32
  }
  func.func @transform_7(%arg0: i32) -> (i32, i32) {
    %c0_i32 = arith.constant 0 : i32
    %c0_i32_0 = arith.constant 0 : i32
    %c0_i32_1 = arith.constant 0 : i32
    return %c0_i32, %c0_i32_0 : i32, i32
  }
  func.func @transform_8(%arg0: i32) -> (i32, i32) {
    %c0_i32 = arith.constant 0 : i32
    %c0_i32_0 = arith.constant 0 : i32
    %c0_i32_1 = arith.constant 0 : i32
    return %c0_i32, %c0_i32_0 : i32, i32
  }
  func.func @transform_9(%arg0: i32) -> (i32, i32) {
    %c0_i32 = arith.constant 0 : i32
    %c0_i32_0 = arith.constant 0 : i32
    %c0_i32_1 = arith.constant 0 : i32
    return %c0_i32, %c0_i32_0 : i32, i32
  }
  func.func @transform_10(%arg0: i32) -> (i32, i32) {
    %c0_i32 = arith.constant 0 : i32
    %c0_i32_0 = arith.constant 0 : i32
    %c0_i32_1 = arith.constant 0 : i32
    return %c0_i32, %c0_i32_0 : i32, i32
  }
  func.func @transform_11(%arg0: i32) -> (i32, i32) {
    %c0_i32 = arith.constant 0 : i32
    %c0_i32_0 = arith.constant 0 : i32
    return %arg0, %c0_i32 : i32, i32
  }
  func.func @transform_12(%arg0: i32) -> (i32, i32) {
    %c0_i32 = arith.constant 0 : i32
    %c0_i32_0 = arith.constant 0 : i32
    return %arg0, %c0_i32 : i32, i32
  }
  func.func @transform_13(%arg0: i32) -> (i32, i32) {
    %c0_i32 = arith.constant 0 : i32
    %c0_i32_0 = arith.constant 0 : i32
    return %arg0, %c0_i32 : i32, i32
  }
}

</mosaic_0001>

<bundles_post_ra>
// kernel: ae_prednet_forward.1
= control target key start
LH: loop header
LB: loop body
LE: loop exit
PB: predicated region body
PF: predicated region fallthrough
CT: control target
= control target key end

     0   :  { %s2411_s0 = inlined_call_operand.hbm [shape: f32[64,512], index: 0, kind: input, shape index: {}]   ;;  %s2412_s1 = inlined_call_operand.hbm [shape: bf16[512,128], index: 1, kind: input, shape index: {}]   ;;  %s2413_s2 = inlined_call_operand.vmem [shape: f32[1,128], index: 2, kind: input, shape index: {}]   ;;  %s2414_s3 = inlined_call_operand.hbm [shape: bf16[128,128], index: 3, kind: input, shape index: {}]   ;;  %s2415_s4 = inlined_call_operand.vmem [shape: f32[1,128], index: 4, kind: input, shape index: {}]   ;;  %s2416_s5 = inlined_call_operand.hbm [shape: bf16[128,128], index: 5, kind: input, shape index: {}]   ;;  %s2417_s6 = inlined_call_operand.hbm [shape: f32[1,128], index: 6, kind: input, shape index: {}]   ;;  %s2418_s7 = inlined_call_operand.hbm [shape: bf16[128,512], index: 7, kind: input, shape index: {}]   ;;  %s2419_s8 = inlined_call_operand.hbm [shape: f32[1,512], index: 8, kind: input, shape index: {}]   ;;  %s2420_s9 = inlined_call_operand.vmem [shape: f32[1,128], index: 9, kind: input, shape index: {}]   ;;  %s2421_s10 = inlined_call_operand.<no memory space> [shape: f32[1,1], index: 10, kind: input, shape index: {}]   ;;  %s2422_s11 = inlined_call_operand.hbm [shape: f32[64,512], index: 11, kind: output, shape index: {0}]   ;;  %s2423_s12 = inlined_call_operand.hbm [shape: f32[64,128], index: 12, kind: output, shape index: {1}]   ;;  %s2424_s13 = inlined_call_operand.vmem [shape: f32[64,1], index: 13, kind: output, shape index: {2}]  }
   0x1   :  { %v19_v0 = vstv %s2421_s10 }
   0x2   :  { %20 = vst [vmem:[#allocation2] sm:$0x1] %v19_v0 }
   0x3   :  { %21 = vsyncpa [#allocation4], 0 }
   0x4   :  { %22 = vsyncpa [#allocation7], 0 }
   0x5   :  { %23 = vsyncpa [#allocation10], 0 }
   0x6   :  { %24 = vsyncpa [#allocation13], 0 }
   0x7   :  { %25 = vsyncpa [#allocation5], 0  ;;  %s44_s29 = sshll.u32 %s2412_s1, 4  ;;  %s45_s29 = int_to_ptr.hbm [resolvable:$true] %s44_s29 }
   0x8   :  { %26 = vsyncpa [#allocation17], 0  ;;  %s2129_s30 = smov [#allocation6]   ;;  %s74_s17 = sshll.u32 %s2416_s5, 4  ;;  %s75_s17 = int_to_ptr.hbm [resolvable:$true] %s74_s17 }
   0x9   :  { %s46_s14 = sshll.u32 %s2129_s30, 4  ;;  %s2130_s10 = smov 64   ;;  %s47_s14 = int_to_ptr.vmem [resolvable:$true] %s46_s14 }
   0xa   :  { %s2131_s18 = smov 4   ;;  %s2132_s19 = smov [#allocation9]  }
   0xb   :  { %52 = dma.hbm_to_vmem [thread:$0]  %s45_s29, 4096, %s47_s14, [#allocation7], %s2130_s10, %s2130_s10, %s2131_s18  }
   0xc   :  { %s76_s20 = sshll.u32 %s2132_s19, 4  ;;  %s98_s22 = sshll.u32 %s2418_s7, 4  ;;  %s77_s20 = int_to_ptr.vmem [resolvable:$true] %s76_s20  ;;  %s99_s22 = int_to_ptr.hbm [resolvable:$true] %s98_s22 }
   0xd   :  { %82 = dma.hbm_to_vmem [thread:$0]  %s75_s17, 1024, %s77_s20, [#allocation10], %s2130_s10, %s2130_s10, %s2131_s18  }
   0xe   :  { %s2133_s5 = smov [#allocation12]   ;;  %s31_s26 = sshll.u32 %s2411_s0, 4  ;;  %s32_s26 = int_to_ptr.hbm [resolvable:$true] %s31_s26 }
   0xf   :  { %s100_s23 = sshll.u32 %s2133_s5, 4  ;;  %s2134_s27 = smov 256   ;;  %s101_s23 = int_to_ptr.vmem [resolvable:$true] %s100_s23 }
  0x10   :  { %s2135_s28 = smov 16   ;;  %s2136_s29 = smov [#allocation3]  }
  0x11   :  { %106 = dma.hbm_to_vmem [thread:$0]  %s99_s22, 4096, %s101_s23, [#allocation13], %s2134_s27, %s2134_s27, %s2135_s28  }
  0x12   :  { %s33_s30 = sshll.u32 %s2136_s29, 4  ;;  %s2137_s7 = smov 512   ;;  %s34_s30 = int_to_ptr.vmem [resolvable:$true] %s33_s30 }
  0x13   :  { %s2138_s14 = smov 32   ;;  %s59_s17 = sshll.u32 %s2414_s3, 4  ;;  %s60_s17 = int_to_ptr.hbm [resolvable:$true] %s59_s17 }
  0x14   :  { %39 = dma.hbm_to_vmem [thread:$0]  %s32_s26, 4096, %s34_s30, [#allocation4], %s2137_s7, %s2137_s7, %s2138_s14  }
  0x15   :  { %s2139_s19 = smov [#allocation8]   ;;  %s88_s1 = sshll.u32 %s2417_s6, 4  ;;  %s89_s1 = int_to_ptr.hbm [resolvable:$true] %s88_s1 }
  0x16   :  { %s61_s0 = sshll.u32 %s2139_s19, 4  ;;  %s2140_s22 = smov [#allocation11]   ;;  %s62_s0 = int_to_ptr.vmem [resolvable:$true] %s61_s0 }
  0x17   :  { %67 = dma.hbm_to_vmem [thread:$0]  %s60_s17, 1024, %s62_s0, [#allocation7], %s2130_s10, %s2130_s10, %s2131_s18  }
  0x18   :  { %s90_s5 = sshll.u32 %s2140_s22, 4  ;;  %s112_s25 = sshll.u32 %s2419_s8, 4  ;;  %s91_s5 = int_to_ptr.vmem [resolvable:$true] %s90_s5  ;;  %s113_s25 = int_to_ptr.hbm [resolvable:$true] %s112_s25 }
  0x19   :  { %93 = dma.hbm_to_vmem [thread:$0]  %s89_s1, 16, %s91_s5, [#allocation10]  }
  0x1a   :  { %s2141_s3 = smov [#allocation14]  }
  0x1b   :  { %s114_s26 = sshll.u32 %s2141_s3, 4  ;;  %s115_s26 = int_to_ptr.vmem [resolvable:$true] %s114_s26 }
  0x1c   :  { %117 = dma.hbm_to_vmem [thread:$0]  %s113_s25, 64, %s115_s26, [#allocation13]  }
  0x1d   :  { %2117 = dma.done.wait [#allocation4], 4096  }
  0x1e   :  { %2118 = vsyncadd [#allocation4], 4294963200 }
  0x1f   :  { %2119 = dma.done.wait [#allocation7], 5120  }
  0x20   :  { %2120 = vsyncadd [#allocation7], 4294962176 }
  0x21   :  { %2121 = dma.done.wait [#allocation10], 1040  }
  0x22   :  { %2122 = vsyncadd [#allocation10], 4294966256 }
  0x23   :  { %2123 = dma.done.wait [#allocation13], 4160  }
  0x24   :  { %2124 = vsyncadd [#allocation13], 4294963136  ;;  %v1726_v1 = vld [vmem:[#allocation6 + $0x38] sm:$0xff]  ;;  %v1725_v3 = vld [vmem:[#allocation6 + $0x30] sm:$0xff]  ;;  %vm1346_vm2 = vcmask 7168   ;;  %s2142_s24 = smov [#allocation16]  }
  0x25   :  { %v1734_v2 = vld [vmem:[#allocation6 + $0x78] sm:$0xff]  ;;  %1799 = vmatpush.bf16.msra.mxu2 %v1726_v1  ;;  %v1733_v4 = vld [vmem:[#allocation6 + $0x70] sm:$0xff]  ;;  %458 = vmatpush.bf16.msra.mxu0 %v1726_v1  ;;  %v1724_v5 = vld [vmem:[#allocation6 + $0x28] sm:$0xff]  ;;  %s1372_s25 = sshll.u32 %s2142_s24, 4  ;;  %s1374_s6 = sshll.u32 %s2423_s12, 4  ;;  %s1373_s25 = int_to_ptr.vmem [resolvable:$true] %s1372_s25  ;;  %s1375_s6 = int_to_ptr.hbm [resolvable:$true] %s1374_s6 }
  0x26   :  { %1807 = vmatpush.bf16.msra.mxu3 %v1734_v2  ;;  %487 = vmatpush.bf16.msra.mxu1 %v1734_v2  ;;  %v1732_v6 = vld [vmem:[#allocation6 + $0x68] sm:$0xff]  ;;  %v1723_v7 = vld [vmem:[#allocation6 + $0x20] sm:$0xff]  ;;  %v1722_v9 = vld [vmem:[#allocation6 + $0x18] sm:$0xff]  ;;  %s2143_s8 = smov 128   ;;  %s2145_s12 = smov [#allocation15]  }
  0x27   :  { %v1731_v8 = vld [vmem:[#allocation6 + $0x60] sm:$0xff]  ;;  %v1730_v10 = vld [vmem:[#allocation6 + $0x58] sm:$0xff]  ;;  %v1721_v11 = vld [vmem:[#allocation6 + $0x10] sm:$0xff]  ;;  %s1361_s27 = sshll.u32 %s2422_s11, 4  ;;  %s1362_s27 = int_to_ptr.hbm [resolvable:$true] %s1361_s27 }
  0x28   :  { %v1729_v12 = vld [vmem:[#allocation6 + $0x50] sm:$0xff]  ;;  %v1720_v13 = vld [vmem:[#allocation6 + $0x8] sm:$0xff]  ;;  %v1719_v15 = vld [vmem:[#allocation6] sm:$0xff] }
  0x29   :  { %1800 = vmatpush.bf16.msra.mxu2 %v1725_v3  ;;  %459 = vmatpush.bf16.msra.mxu0 %v1725_v3  ;;  %v1728_v14 = vld [vmem:[#allocation6 + $0x48] sm:$0xff]  ;;  %v1727_v16 = vld [vmem:[#allocation6 + $0x40] sm:$0xff]  ;;  %v1742_v21 = vld [vmem:[#allocation6 + $0xb8] sm:$0xff] }
  0x2a   :  { %1808 = vmatpush.bf16.msra.mxu3 %v1733_v4  ;;  %488 = vmatpush.bf16.msra.mxu1 %v1733_v4  ;;  %v166_v17 = vld [vmem:[#allocation3 + $0x80] sm:$0xff]  ;;  %v167_v19 = vld [vmem:[#allocation3 + $0x88] sm:$0xff]  ;;  %v1750_v22 = vld [vmem:[#allocation6 + $0xf8] sm:$0xff] }
  0x2b   :  { %v170_v18 = vld [vmem:[#allocation3 + $0xa0] sm:$0xff]  ;;  %v171_v20 = vld [vmem:[#allocation3 + $0xa8] sm:$0xff]  ;;  %v1741_v29 = vld [vmem:[#allocation6 + $0xb0] sm:$0xff] }
  0x2c   :  { %v150_v23 = vld [vmem:[#allocation3] sm:$0xff]  ;;  %v190_v24 = vpack.c.bf16 %v170_v18, %v166_v17  ;;  %v191_v25 = vpack.c.bf16 %v171_v20, %v167_v19  ;;  %v151_v27 = vld [vmem:[#allocation3 + $0x8] sm:$0xff]  ;;  %v1749_v30 = vld [vmem:[#allocation6 + $0xf0] sm:$0xff] }
  0x2d   :  { %1801 = vmatpush.bf16.msra.mxu2 %v1724_v5  ;;  %460 = vmatpush.bf16.msra.mxu0 %v1724_v5  ;;  %v154_v26 = vld [vmem:[#allocation3 + $0x20] sm:$0xff]  ;;  %v155_v28 = vld [vmem:[#allocation3 + $0x28] sm:$0xff]  ;;  %v1738_v41 = vld [vmem:[#allocation6 + $0x98] sm:$0xff] }
  0x2e   :  { %1809 = vmatpush.bf16.msra.mxu3 %v1732_v6  ;;  %489 = vmatpush.bf16.msra.mxu1 %v1732_v6  ;;  %v182_v31 = vpack.c.bf16 %v154_v26, %v150_v23  ;;  %v183_v32 = vpack.c.bf16 %v155_v28, %v151_v27  ;;  %v1740_v33 = vld [vmem:[#allocation6 + $0xa8] sm:$0xff]  ;;  %v1739_v35 = vld [vmem:[#allocation6 + $0xa0] sm:$0xff]  ;;  %v1746_v42 = vld [vmem:[#allocation6 + $0xd8] sm:$0xff] }
  0x2f   :  { %v1748_v34 = vld [vmem:[#allocation6 + $0xe8] sm:$0xff]  ;;  %v1747_v36 = vld [vmem:[#allocation6 + $0xe0] sm:$0xff]  ;;  %v1737_v49 = vld [vmem:[#allocation6 + $0x90] sm:$0xff] }
  0x30   :  { %v174_v37 = vld [vmem:[#allocation3 + $0xc0] sm:$0xff]  ;;  %v175_v39 = vld [vmem:[#allocation3 + $0xc8] sm:$0xff]  ;;  %v1745_v50 = vld [vmem:[#allocation6 + $0xd0] sm:$0xff] }
  0x31   :  { %1802 = vmatpush.bf16.msra.mxu2 %v1723_v7  ;;  %461 = vmatpush.bf16.msra.mxu0 %v1723_v7  ;;  %v178_v38 = vld [vmem:[#allocation3 + $0xe0] sm:$0xff]  ;;  %v179_v40 = vld [vmem:[#allocation3 + $0xe8] sm:$0xff]  ;;  %v152_v57 = vld [vmem:[#allocation3 + $0x10] sm:$0xff] }
  0x32   :  { %1810 = vmatpush.bf16.msra.mxu3 %v1731_v8  ;;  %490 = vmatpush.bf16.msra.mxu1 %v1731_v8  ;;  %v158_v43 = vld [vmem:[#allocation3 + $0x40] sm:$0xff]  ;;  %v194_v44 = vpack.c.bf16 %v178_v38, %v174_v37  ;;  %v195_v45 = vpack.c.bf16 %v179_v40, %v175_v39  ;;  %v159_v47 = vld [vmem:[#allocation3 + $0x48] sm:$0xff]  ;;  %v156_v58 = vld [vmem:[#allocation3 + $0x30] sm:$0xff] }
  0x33   :  { %v162_v46 = vld [vmem:[#allocation3 + $0x60] sm:$0xff]  ;;  %v163_v48 = vld [vmem:[#allocation3 + $0x68] sm:$0xff]  ;;  %v153_v59 = vld [vmem:[#allocation3 + $0x18] sm:$0xff]  ;;  %v184_v61 = vpack.c.bf16 %v156_v58, %v152_v57 }
  0x34   :  { %v186_v51 = vpack.c.bf16 %v162_v46, %v158_v43  ;;  %v187_v52 = vpack.c.bf16 %v163_v48, %v159_v47  ;;  %v1736_v53 = vld [vmem:[#allocation6 + $0x88] sm:$0xff]  ;;  %v1735_v55 = vld [vmem:[#allocation6 + $0x80] sm:$0xff]  ;;  %v157_v60 = vld [vmem:[#allocation3 + $0x38] sm:$0xff] }
  0x35   :  { %1803 = vmatpush.bf16.msra.mxu2 %v1722_v9  ;;  %462 = vmatpush.bf16.msra.mxu0 %v1722_v9  ;;  %v1744_v54 = vld [vmem:[#allocation6 + $0xc8] sm:$0xff]  ;;  %v1743_v56 = vld [vmem:[#allocation6 + $0xc0] sm:$0xff]  ;;  %v185_v62 = vpack.c.bf16 %v157_v60, %v153_v59  ;;  %v160_v63 = vld [vmem:[#allocation3 + $0x50] sm:$0xff] }
  0x36   :  { %1811 = vmatpush.bf16.msra.mxu3 %v1730_v10  ;;  %491 = vmatpush.bf16.msra.mxu1 %v1730_v10  ;;  %v164_v0 = vld [vmem:[#allocation3 + $0x70] sm:$0xff]  ;;  %v161_v1 = vld [vmem:[#allocation3 + $0x58] sm:$0xff]  ;;  %v1756_v19 = vld [vmem:[#allocation8 + $0x28] sm:$0xff] }
  0x37   :  { %v165_v2 = vld [vmem:[#allocation3 + $0x78] sm:$0xff]  ;;  %v188_v3 = vpack.c.bf16 %v164_v0, %v160_v63  ;;  %v168_v5 = vld [vmem:[#allocation3 + $0x90] sm:$0xff] }
  0x38   :  { %v189_v4 = vpack.c.bf16 %v165_v2, %v161_v1  ;;  %v172_v6 = vld [vmem:[#allocation3 + $0xb0] sm:$0xff]  ;;  %v169_v7 = vld [vmem:[#allocation3 + $0x98] sm:$0xff] }
  0x39   :  { %1804 = vmatpush.bf16.msra.mxu2 %v1721_v11  ;;  %463 = vmatpush.bf16.msra.mxu0 %v1721_v11  ;;  %v173_v8 = vld [vmem:[#allocation3 + $0xb8] sm:$0xff]  ;;  %v192_v9 = vpack.c.bf16 %v172_v6, %v168_v5  ;;  %v176_v11 = vld [vmem:[#allocation3 + $0xd0] sm:$0xff] }
  0x3a   :  { %1812 = vmatpush.bf16.msra.mxu3 %v1729_v12  ;;  %492 = vmatpush.bf16.msra.mxu1 %v1729_v12  ;;  %v193_v10 = vpack.c.bf16 %v173_v8, %v169_v7  ;;  %v180_v12 = vld [vmem:[#allocation3 + $0xf0] sm:$0xff]  ;;  %v1758_v17 = vld [vmem:[#allocation8 + $0x38] sm:$0xff] }
  0x3b   :  { %v1757_v18 = vld [vmem:[#allocation8 + $0x30] sm:$0xff]  ;;  %v2255_v20 = vld [vmem:[%s2413_s2] ss:$0 sm:$0xff]  ;;  %s2144_s2 = smov 8  }
  0x3c   :  { %v1754_v26 = vld [vmem:[#allocation8 + $0x18] sm:$0xff] }
  0x3d   :  { %1805 = vmatpush.bf16.msra.mxu2 %v1720_v13  ;;  %464 = vmatpush.bf16.msra.mxu0 %v1720_v13  ;;  %v177_v13 = vld [vmem:[#allocation3 + $0xd8] sm:$0xff] }
  0x3e   :  { %1813 = vmatpush.bf16.msra.mxu3 %v1728_v14  ;;  %493 = vmatpush.bf16.msra.mxu1 %v1728_v14  ;;  %v181_v14 = vld [vmem:[#allocation3 + $0xf8] sm:$0xff] }
  0x41   :  { %1806 = vmatpush.bf16.msra.mxu2 %v1719_v15  ;;  %465 = vmatpush.bf16.msra.mxu0 %v1719_v15  ;;  %v196_v15 = vpack.c.bf16 %v180_v12, %v176_v11 }
  0x42   :  { %1814 = vmatpush.bf16.msra.mxu3 %v1727_v16  ;;  %494 = vmatpush.bf16.msra.mxu1 %v1727_v16  ;;  %v197_v16 = vpack.c.bf16 %v181_v14, %v177_v13 }
  0x44   :  { %476 = vmatmul.bf16.vlgmr.msra.gmra.mxu2 %v190_v24  ;;  %466 = vmatmul.bf16.vlgmr.msra.gmra.mxu0 %v182_v31  ;;  %v1755_v24 = vld [vmem:[#allocation8 + $0x20] sm:$0xff] }
  0x45   :  { %516 = vmatpush.bf16.msrb.mxu2 %v1742_v21  ;;  %505 = vmatmul.bf16.vlgmr.msra.gmra.mxu3 %v191_v25 }
  0x46   :  { %545 = vmatpush.bf16.msrb.mxu3 %v1750_v22  ;;  %495 = vmatmul.bf16.vlgmr.msra.gmra.mxu1 %v183_v32 }
  0x47   :  { %654 = vmatpush.bf16.msrb.mxu0 %v1758_v17 }
  0x49   :  { %517 = vmatpush.bf16.msrb.mxu2 %v1741_v29  ;;  %v1753_v29 = vld [vmem:[#allocation8 + $0x10] sm:$0xff] }
  0x4a   :  { %546 = vmatpush.bf16.msrb.mxu3 %v1749_v30  ;;  %v1752_v30 = vld [vmem:[#allocation8 + $0x8] sm:$0xff] }
  0x4b   :  { %655 = vmatpush.bf16.msrb.mxu0 %v1757_v18 }
  0x4d   :  { %518 = vmatpush.bf16.msrb.mxu2 %v1740_v33 }
  0x4e   :  { %547 = vmatpush.bf16.msrb.mxu3 %v1748_v34 }
  0x4f   :  { %656 = vmatpush.bf16.msrb.mxu0 %v1756_v19 }
  0x51   :  { %519 = vmatpush.bf16.msrb.mxu2 %v1739_v35  ;;  %v1751_v35 = vld [vmem:[#allocation8] sm:$0xff] }
  0x52   :  { %548 = vmatpush.bf16.msrb.mxu3 %v1747_v36 }
  0x53   :  { %657 = vmatpush.bf16.msrb.mxu0 %v1755_v24 }
  0x54   :  { %481 = vmatmul.bf16.gmra.mxu2 %v194_v44  ;;  %471 = vmatmul.bf16.gmra.mxu0 %v186_v51 }
  0x55   :  { %520 = vmatpush.bf16.msrb.mxu2 %v1738_v41  ;;  %510 = vmatmul.bf16.gmra.mxu3 %v195_v45 }
  0x56   :  { %549 = vmatpush.bf16.msrb.mxu3 %v1746_v42  ;;  %500 = vmatmul.bf16.gmra.mxu1 %v187_v52 }
  0x57   :  { %658 = vmatpush.bf16.msrb.mxu0 %v1754_v26  ;;  %v1764_v26 = vld [vmem:[#allocation9 + $0x28] sm:$0xff] }
  0x59   :  { %521 = vmatpush.bf16.msrb.mxu2 %v1737_v49 }
  0x5a   :  { %550 = vmatpush.bf16.msrb.mxu3 %v1745_v50 }
  0x5b   :  { %659 = vmatpush.bf16.msrb.mxu0 %v1753_v29 }
  0x5d   :  { %522 = vmatpush.bf16.msrb.mxu2 %v1736_v53 }
  0x5e   :  { %551 = vmatpush.bf16.msrb.mxu3 %v1744_v54 }
  0x5f   :  { %660 = vmatpush.bf16.msrb.mxu0 %v1752_v30 }
  0x61   :  { %523 = vmatpush.bf16.msrb.mxu2 %v1735_v55 }
  0x62   :  { %552 = vmatpush.bf16.msrb.mxu3 %v1743_v56 }
  0x63   :  { %661 = vmatpush.bf16.msrb.mxu0 %v1751_v35 }
  0x64   :  { %524 = vmatmul.bf16.vlgmr.msrb.gmra.mxu2 %v184_v61 }
  0x65   :  { %553 = vmatmul.bf16.vlgmr.msrb.gmra.mxu3 %v185_v62 }
  0x74   :  { %529 = vmatmul.bf16.gmra.mxu2 %v188_v3 }
  0x75   :  { %558 = vmatmul.bf16.gmra.mxu3 %v189_v4 }
  0x84   :  { %534 = vmatmul.bf16.gmra.mxu2 %v192_v9 }
  0x85   :  { %563 = vmatmul.bf16.gmra.mxu3 %v193_v10 }
  0x94   :  { %539 = vmatmul.bf16.gmra.mxu2 %v196_v15 }
  0x95   :  { %568 = vmatmul.bf16.gmra.mxu3 %v197_v16  ;;  %v1766_v16 = vld [vmem:[#allocation9 + $0x38] sm:$0xff] }
  0x96   :  { %755 = vmatpush.bf16.msrb.mxu1 %v1766_v16 }
  0xc1   :  { %v467_v34 = vpop.f32.mrf.mxu0 }
  0xc2   :  { %v468_v41 = vadd.f32 %v2255_v20, %v467_v34  ;;  %v1762_v34 = vld [vmem:[#allocation9 + $0x18] sm:$0xff] }
  0xc3   :  { %v496_v37 = vpop.f32.mrf.mxu1 }
  0xc4   :  { %v497_v43 = vadd.f32 %v496_v37, %v468_v41 }
  0xc7   :  { %v477_v21 = vpop.f32.mrf.mxu2 }
  0xc8   :  { %v506_v22 = vpop.f32.mrf.mxu3  ;;  %v478_v23 = vadd.f32 %v2255_v20, %v477_v21 }
  0xc9   :  { %v469_v40 = vpop.f32.mrf.mxu0 }
  0xca   :  { %v2258_v25 = vadd.f32 %v506_v22, %v478_v23  ;;  %v470_v46 = vadd.f32 %v2255_v20, %v469_v40  ;;  %v1765_v22 = vld [vmem:[#allocation9 + $0x30] sm:$0xff] }
  0xcb   :  { %v498_v42 = vpop.f32.mrf.mxu1  ;;  %756 = vmatpush.bf16.msrb.mxu1 %v1765_v22 }
  0xcc   :  { %v499_v49 = vadd.f32 %v498_v42, %v470_v46 }
  0xcf   :  { %v479_v27 = vpop.f32.mrf.mxu2  ;;  %757 = vmatpush.bf16.msrb.mxu1 %v1764_v26  ;;  %v1789_v26 = vld [vmem:[#allocation12 + $0xac] sm:$0xf0] }
  0xd0   :  { %v508_v28 = vpop.f32.mrf.mxu3  ;;  %v480_v13 = vadd.f32 %v2255_v20, %v479_v27  ;;  %v1763_v27 = vld [vmem:[#allocation9 + $0x20] sm:$0xff] }
  0xd1   :  { %v472_v48 = vpop.f32.mrf.mxu0 }
  0xd2   :  { %v473_v56 = vadd.f32 %v2255_v20, %v472_v48  ;;  %v509_v17 = vadd.f32 %v508_v28, %v480_v13  ;;  %v1791_v13 = vld [vmem:[#allocation12 + $0xc4] sm:$0xf] }
  0xd3   :  { %v501_v54 = vpop.f32.mrf.mxu1  ;;  %758 = vmatpush.bf16.msrb.mxu1 %v1763_v27  ;;  %v1787_v27 = vld [vmem:[#allocation12 + $0xa4] sm:$0xf] }
  0xd4   :  { %v502_v58 = vadd.f32 %v501_v54, %v473_v56 }
  0xd7   :  { %v482_v31 = vpop.f32.mrf.mxu2  ;;  %759 = vmatpush.bf16.msrb.mxu1 %v1762_v34 }
  0xd8   :  { %v511_v32 = vpop.f32.mrf.mxu3  ;;  %v483_v33 = vadd.f32 %v2255_v20, %v482_v31 }
  0xd9   :  { %v474_v57 = vpop.f32.mrf.mxu0 }
  0xda   :  { %v2261_v36 = vadd.f32 %v511_v32, %v483_v33  ;;  %v475_v63 = vadd.f32 %v2255_v20, %v474_v57 }
  0xdb   :  { %v503_v0 = vpop.f32.mrf.mxu1 }
  0xdc   :  { %v504_v3 = vadd.f32 %v503_v0, %v475_v63  ;;  %v1797_v63 = vld [vmem:[#allocation12 + $0xec] sm:$0xf0]  ;;  %v1795_v0 = vld [vmem:[#allocation12 + $0xe4] sm:$0xf] }
  0xdf   :  { %v2263_v38 = vpop.f32.mrf.mxu2 }
  0xe0   :  { %v2265_v39 = vpop.f32.mrf.mxu3  ;;  %v485_v28 = vadd.f32 %v2255_v20, %v2263_v38  ;;  %v1761_v20 = vld [vmem:[#allocation9 + $0x10] sm:$0xff]  ;;  %v1759_v38 = vld [vmem:[#allocation9] sm:$0xff] }
  0xe1   :  { %760 = vmatpush.bf16.msrb.mxu1 %v1761_v20 }
  0xe2   :  { %v514_v35 = vadd.f32 %v2265_v39, %v485_v28  ;;  %v2280_v39 = vld [vmem:[%s2415_s4] ss:$0 sm:$0xff]  ;;  %v1681_v28 = vld [vmem:[#allocation12 + $0xa8] sm:$0xf] }
  0xe7   :  { %v525_v44 = vpop.f32.mrf.mxu2 }
  0xe8   :  { %v554_v45 = vpop.f32.mrf.mxu3  ;;  %v526_v47 = vadd.f32 %v525_v44, %v497_v43 }
  0xea   :  { %v555_v50 = vadd.f32 %v554_v45, %v526_v47  ;;  %v2285_v47 = vld [vmem:[%s2420_s9] ss:$0 sm:$0xff] }
  0xec   :  { %1837 = vtanh.f32 %v555_v50 }
  0xef   :  { %v527_v51 = vpop.f32.mrf.mxu2 }
  0xf0   :  { %v556_v52 = vpop.f32.mrf.mxu3  ;;  %v528_v53 = vadd.f32 %v527_v51, %v499_v49 }
  0xf2   :  { %v557_v55 = vadd.f32 %v556_v52, %v528_v53  ;;  %v1838_v61 = vpop.eup %1837 }
  0xf4   :  { %1839 = vtanh.f32 %v557_v55 }
  0xf7   :  { %v530_v59 = vpop.f32.mrf.mxu2 }
  0xf8   :  { %v559_v60 = vpop.f32.mrf.mxu3  ;;  %v531_v1 = vadd.f32 %v530_v59, %v502_v58 }
  0xfa   :  { %v1840_v62 = vpop.eup %1839  ;;  %v560_v4 = vadd.f32 %v559_v60, %v531_v1 }
  0xfb   :  { %v582_v2 = vpack.c.bf16 %v1840_v62, %v1838_v61  ;;  %v1705_v62 = vld [vmem:[#allocation12 + $0xe0] sm:$0xf] }
  0xfc   :  { %1841 = vtanh.f32 %v560_v4  ;;  %v1706_v1 = vor.u32 %v1797_v63, %v1705_v62  ;;  %v1798_v4 = vld [vmem:[#allocation12 + $0xf4] sm:$0xf0]  ;;  %v1641_v62 = vld [vmem:[#allocation12 + $0x60] sm:$0xf]  ;;  %v1781_v63 = vld [vmem:[#allocation12 + $0x6c] sm:$0xf0] }
  0xfd   :  { %662 = vmatmul.bf16.vlgmr.msrb.gmra.mxu0 %v582_v2  ;;  %v1707_v2 = vld [vmem:[#allocation12 + $0xf0] sm:$0xf0] }
  0xfe   :  { %998 = vmatpush.bf16.msra.mxu2 %v1706_v1  ;;  %v1642_v1 = vor.u32 %v1781_v63, %v1641_v62 }
  0xff   :  { %v532_v5 = vpop.f32.mrf.mxu2 }
 0x100   :  { %v561_v6 = vpop.f32.mrf.mxu3  ;;  %v533_v7 = vadd.f32 %v532_v5, %v504_v3  ;;  %v1713_v3 = vld [vmem:[#allocation12 + $0xe8] sm:$0xf]  ;;  %v1710_v5 = vor.u32 %v1795_v0, %v1707_v2  ;;  %v1779_v0 = vld [vmem:[#allocation12 + $0x64] sm:$0xf]  ;;  %v1643_v2 = vld [vmem:[#allocation12 + $0x70] sm:$0xf0] }
 0x102   :  { %v562_v8 = vadd.f32 %v561_v6, %v533_v7  ;;  %v1842_v11 = vpop.eup %1841  ;;  %v1714_v6 = vor.u32 %v1798_v4, %v1713_v3  ;;  %v1796_v7 = vld [vmem:[#allocation12 + $0xec] sm:$0xf]  ;;  %1027 = vmatpush.bf16.msra.mxu3 %v1710_v5  ;;  %v1782_v3 = vld [vmem:[#allocation12 + $0x74] sm:$0xf0]  ;;  %v1646_v4 = vor.u32 %v1779_v0, %v1643_v2 }
 0x103   :  { %v1780_v5 = vld [vmem:[#allocation12 + $0x6c] sm:$0xf] }
 0x104   :  { %1843 = vtanh.f32 %v562_v8  ;;  %v1715_v8 = vld [vmem:[#allocation12 + $0xf8] sm:$0xf0]  ;;  %1056 = vmatpush.bf16.msra.mxu0 %v1714_v6 }
 0x105   :  { %v1651_v6 = vld [vmem:[#allocation12 + $0x78] sm:$0xf0] }
 0x107   :  { %v535_v9 = vpop.f32.mrf.mxu2 }
 0x108   :  { %v564_v10 = vpop.f32.mrf.mxu3  ;;  %v536_v14 = vadd.f32 %v535_v9, %v2258_v25  ;;  %v1689_v9 = vld [vmem:[#allocation12 + $0xc0] sm:$0xf] }
 0x10a   :  { %v1844_v12 = vpop.eup %1843  ;;  %v565_v18 = vadd.f32 %v564_v10, %v536_v14  ;;  %v1691_v14 = vld [vmem:[#allocation12 + $0xd0] sm:$0xf0] }
 0x10b   :  { %v583_v15 = vpack.c.bf16 %v1844_v12, %v1842_v11  ;;  %v1718_v11 = vor.u32 %v1796_v7, %v1715_v8  ;;  %v1793_v12 = vld [vmem:[#allocation12 + $0xcc] sm:$0xf0]  ;;  %v1654_v7 = vor.u32 %v1780_v5, %v1651_v6  ;;  %v1625_v8 = vld [vmem:[#allocation12 + $0x40] sm:$0xf] }
 0x10c   :  { %1845 = vtanh.f32 %v565_v18  ;;  %v1690_v16 = vor.u32 %v1793_v12, %v1689_v9  ;;  %v1697_v18 = vld [vmem:[#allocation12 + $0xc8] sm:$0xf]  ;;  %v1777_v9 = vld [vmem:[#allocation12 + $0x4c] sm:$0xf0]  ;;  %v1627_v12 = vld [vmem:[#allocation12 + $0x50] sm:$0xf0] }
 0x10d   :  { %667 = vmatmul.bf16.gmra.mxu0 %v583_v15 }
 0x10e   :  { %999 = vmatpush.bf16.msra.mxu2 %v1690_v16 }
 0x10f   :  { %v537_v19 = vpop.f32.mrf.mxu2 }
 0x110   :  { %v566_v21 = vpop.f32.mrf.mxu3  ;;  %v538_v23 = vadd.f32 %v537_v19, %v509_v17  ;;  %v1694_v17 = vor.u32 %v1791_v13, %v1691_v14  ;;  %v1794_v19 = vld [vmem:[#allocation12 + $0xd4] sm:$0xf0]  ;;  %v1633_v13 = vld [vmem:[#allocation12 + $0x48] sm:$0xf] }
 0x111   :  { %v1698_v22 = vor.u32 %v1794_v19, %v1697_v18  ;;  %v1778_v14 = vld [vmem:[#allocation12 + $0x54] sm:$0xf0]  ;;  %v1635_v18 = vld [vmem:[#allocation12 + $0x58] sm:$0xf0] }
 0x112   :  { %v567_v24 = vadd.f32 %v566_v21, %v538_v23  ;;  %v1846_v25 = vpop.eup %1845  ;;  %v1792_v21 = vld [vmem:[#allocation12 + $0xcc] sm:$0xf]  ;;  %v1699_v23 = vld [vmem:[#allocation12 + $0xd8] sm:$0xf0]  ;;  %1028 = vmatpush.bf16.msra.mxu3 %v1694_v17  ;;  %v1634_v16 = vor.u32 %v1778_v14, %v1633_v13 }
 0x113   :  { %1057 = vmatpush.bf16.msra.mxu0 %v1698_v22  ;;  %v1776_v17 = vld [vmem:[#allocation12 + $0x4c] sm:$0xf]  ;;  %v1609_v22 = vld [vmem:[#allocation12 + $0x20] sm:$0xf] }
 0x114   :  { %1847 = vtanh.f32 %v567_v24  ;;  %v1673_v24 = vld [vmem:[#allocation12 + $0xa0] sm:$0xf]  ;;  %v1638_v19 = vor.u32 %v1776_v17, %v1635_v18 }
 0x117   :  { %v540_v29 = vpop.f32.mrf.mxu2 }
 0x118   :  { %v569_v30 = vpop.f32.mrf.mxu3  ;;  %v541_v32 = vadd.f32 %v540_v29, %v2261_v36  ;;  %v1760_v36 = vld [vmem:[#allocation9 + $0x8] sm:$0xff] }
 0x119   :  { %761 = vmatpush.bf16.msrb.mxu1 %v1760_v36 }
 0x11a   :  { %v1848_v31 = vpop.eup %1847  ;;  %v570_v37 = vadd.f32 %v569_v30, %v541_v32  ;;  %v1702_v30 = vor.u32 %v1792_v21, %v1699_v23  ;;  %v1790_v32 = vld [vmem:[#allocation12 + $0xb4] sm:$0xf0]  ;;  %v2303_v21 = vld [vmem:[#allocation2] ss:$0 sm:$0xff]  ;;  %v1773_v23 = vld [vmem:[#allocation12 + $0x2c] sm:$0xf0] }
 0x11b   :  { %v584_v33 = vpack.c.bf16 %v1848_v31, %v1846_v25  ;;  %v1675_v25 = vld [vmem:[#allocation12 + $0xb0] sm:$0xf0]  ;;  %v1674_v31 = vor.u32 %v1789_v26, %v1673_v24  ;;  %v1771_v24 = vld [vmem:[#allocation12 + $0x24] sm:$0xf]  ;;  %v1610_v26 = vor.u32 %v1773_v23, %v1609_v22 }
 0x11c   :  { %1849 = vtanh.f32 %v570_v37  ;;  %v1678_v34 = vor.u32 %v1787_v27, %v1675_v25  ;;  %v1657_v37 = vld [vmem:[#allocation12 + $0x80] sm:$0xf]  ;;  %v1774_v27 = vld [vmem:[#allocation12 + $0x34] sm:$0xf0] }
 0x11d   :  { %672 = vmatmul.bf16.gmra.mxu0 %v584_v33  ;;  %762 = vmatpush.bf16.msrb.mxu1 %v1759_v38  ;;  %v1788_v33 = vld [vmem:[#allocation12 + $0xac] sm:$0xf] }
 0x11e   :  { %1000 = vmatpush.bf16.msra.mxu2 %v1674_v31  ;;  %1029 = vmatpush.bf16.msra.mxu3 %v1678_v34 }
 0x11f   :  { %v542_v40 = vpop.f32.mrf.mxu2 }
 0x120   :  { %v543_v41 = vadd.f32 %v542_v40, %v514_v35  ;;  %v571_v42 = vpop.f32.mrf.mxu3  ;;  %v1683_v35 = vld [vmem:[#allocation12 + $0xb8] sm:$0xf0]  ;;  %v1785_v40 = vld [vmem:[#allocation12 + $0x8c] sm:$0xf0] }
 0x121   :  { %1085 = vmatpush.bf16.msra.mxu1 %v1718_v11  ;;  %v1626_v11 = vor.u32 %v1777_v9, %v1625_v8 }
 0x122   :  { %v572_v43 = vadd.f32 %v571_v42, %v543_v41  ;;  %v1850_v44 = vpop.eup %1849  ;;  %v1682_v41 = vor.u32 %v1790_v32, %v1681_v28  ;;  %v1686_v42 = vor.u32 %v1788_v33, %v1683_v35  ;;  %v1772_v28 = vld [vmem:[#allocation12 + $0x2c] sm:$0xf]  ;;  %v1619_v32 = vld [vmem:[#allocation12 + $0x38] sm:$0xf0] }
 0x123   :  { %v1622_v34 = vor.u32 %v1772_v28, %v1619_v32 }
 0x124   :  { %1851 = vtanh.f32 %v572_v43  ;;  %v1783_v43 = vld [vmem:[#allocation12 + $0x84] sm:$0xf]  ;;  %1058 = vmatpush.bf16.msra.mxu0 %v1682_v41 }
 0x125   :  { %1086 = vmatpush.bf16.msra.mxu1 %v1702_v30  ;;  %v1617_v30 = vld [vmem:[#allocation12 + $0x28] sm:$0xf]  ;;  %v1767_v41 = vld [vmem:[#allocation12 + $0x4] sm:$0xf] }
 0x126   :  { %v1618_v31 = vor.u32 %v1774_v27, %v1617_v30 }
 0x129   :  { %1087 = vmatpush.bf16.msra.mxu1 %v1686_v42 }
 0x12a   :  { %v1852_v45 = vpop.eup %1851 }
 0x12b   :  { %v585_v46 = vpack.c.bf16 %v1852_v45, %v1850_v44  ;;  %v1659_v44 = vld [vmem:[#allocation12 + $0x90] sm:$0xf0] }
 0x12c   :  { %v1662_v36 = vor.u32 %v1783_v43, %v1659_v44  ;;  %v1595_v43 = vld [vmem:[#allocation12 + $0x10] sm:$0xf0]  ;;  %v1601_v44 = vld [vmem:[#allocation12 + $0x8] sm:$0xf] }
 0x12d   :  { %677 = vmatmul.bf16.gmra.mxu0 %v585_v46  ;;  %v1658_v46 = vor.u32 %v1785_v40, %v1657_v37  ;;  %v1593_v37 = vld [vmem:[#allocation12] sm:$0xf]  ;;  %v1769_v40 = vld [vmem:[#allocation12 + $0xc] sm:$0xf0] }
 0x12e   :  { %1030 = vmatpush.bf16.msra.mxu3 %v1662_v36  ;;  %v1594_v42 = vor.u32 %v1769_v40, %v1593_v37 }
 0x12f   :  { %1001 = vmatpush.bf16.msra.mxu2 %v1658_v46 }
 0x132   :  { %1031 = vmatpush.bf16.msra.mxu3 %v1646_v4 }
 0x133   :  { %1002 = vmatpush.bf16.msra.mxu2 %v1642_v1 }
 0x137   :  { %1003 = vmatpush.bf16.msra.mxu2 %v1626_v11 }
 0x13b   :  { %1004 = vmatpush.bf16.msra.mxu2 %v1610_v26 }
 0x13f   :  { %1005 = vmatpush.bf16.msra.mxu2 %v1594_v42 }
 0x17a   :  { %v663_v48 = vpop.f32.mrf.mxu0 }
 0x17b   :  { %v664_v49 = vadd.f32 %v2280_v39, %v663_v48 }
 0x17d   :  { %1338 = vst [vmem:[#allocation16] sm:$0xff] %v664_v49  ;;  %v1118_v50 = vmul.f32 %v2285_v47, %v664_v49 }
 0x17f   :  { %1126 = vadd.xlane.f32.xlu0 %v1118_v50 }
 0x182   :  { %v665_v51 = vpop.f32.mrf.mxu0 }
 0x183   :  { %v666_v52 = vadd.f32 %v2280_v39, %v665_v51 }
 0x185   :  { %1339 = vst [vmem:[#allocation16 + $0x8] sm:$0xff] %v666_v52  ;;  %v1119_v53 = vmul.f32 %v2285_v47, %v666_v52  ;;  %v683_v54 = vpack.c.bf16 %v666_v52, %v664_v49 }
 0x187   :  { %1128 = vadd.xlane.f32.xlu0 %v1119_v53  ;;  %763 = vmatmul.bf16.vlgmr.msrb.gmra.mxu1 %v683_v54 }
 0x18a   :  { %v668_v55 = vpop.f32.mrf.mxu0 }
 0x18b   :  { %v669_v56 = vadd.f32 %v2280_v39, %v668_v55 }
 0x18d   :  { %1340 = vst [vmem:[#allocation16 + $0x10] sm:$0xff] %v669_v56  ;;  %v1120_v57 = vmul.f32 %v2285_v47, %v669_v56 }
 0x18f   :  { %1130 = vadd.xlane.f32.xlu1 %v1120_v57  ;;  %v1786_v57 = vld [vmem:[#allocation12 + $0x94] sm:$0xf0] }
 0x192   :  { %v670_v58 = vpop.f32.mrf.mxu0 }
 0x193   :  { %v671_v59 = vadd.f32 %v2280_v39, %v670_v58  ;;  %v1784_v58 = vld [vmem:[#allocation12 + $0x8c] sm:$0xf] }
 0x195   :  { %1341 = vst [vmem:[#allocation16 + $0x18] sm:$0xff] %v671_v59  ;;  %v1121_v60 = vmul.f32 %v2285_v47, %v671_v59  ;;  %v684_v61 = vpack.c.bf16 %v671_v59, %v669_v56  ;;  %v1665_v56 = vld [vmem:[#allocation12 + $0x88] sm:$0xf] }
 0x196   :  { %v1666_v59 = vor.u32 %v1786_v57, %v1665_v56 }
 0x197   :  { %1132 = vadd.xlane.f32.xlu1 %v1121_v60  ;;  %768 = vmatmul.bf16.gmra.mxu1 %v684_v61  ;;  %v1667_v60 = vld [vmem:[#allocation12 + $0x98] sm:$0xf0] }
 0x198   :  { %v1670_v61 = vor.u32 %v1784_v58, %v1667_v60  ;;  %1059 = vmatpush.bf16.msra.mxu0 %v1666_v59 }
 0x19a   :  { %v673_v10 = vpop.f32.mrf.mxu0  ;;  %1088 = vmatpush.bf16.msra.mxu1 %v1670_v61  ;;  %v2308_v61 = vld [vmem:[#allocation11] ss:$0 sm:$0xff] }
 0x19b   :  { %v674_v15 = vadd.f32 %v2280_v39, %v673_v10  ;;  %v1775_v10 = vld [vmem:[#allocation12 + $0x44] sm:$0xf] }
 0x19d   :  { %1342 = vst [vmem:[#allocation16 + $0x20] sm:$0xff] %v674_v15  ;;  %v1122_v29 = vmul.f32 %v2285_v47, %v674_v15 }
 0x19e   :  { %1089 = vmatpush.bf16.msra.mxu1 %v1654_v7 }
 0x19f   :  { %1134 = vadd.xlane.f32.xlu2 %v1122_v29  ;;  %v1611_v29 = vld [vmem:[#allocation12 + $0x30] sm:$0xf0] }
 0x1a0   :  { %v1614_v25 = vor.u32 %v1771_v24, %v1611_v29 }
 0x1a2   :  { %v675_v45 = vpop.f32.mrf.mxu0  ;;  %1090 = vmatpush.bf16.msra.mxu1 %v1638_v19 }
 0x1a3   :  { %v676_v20 = vadd.f32 %v2280_v39, %v675_v45  ;;  %v1770_v45 = vld [vmem:[#allocation12 + $0x14] sm:$0xf0] }
 0x1a4   :  { %v1602_v36 = vor.u32 %v1770_v45, %v1601_v44 }
 0x1a5   :  { %1343 = vst [vmem:[#allocation16 + $0x28] sm:$0xff] %v676_v20  ;;  %v1123_v38 = vmul.f32 %v2285_v47, %v676_v20  ;;  %v685_v48 = vpack.c.bf16 %v676_v20, %v674_v15  ;;  %v1630_v15 = vor.u32 %v1775_v10, %v1627_v12  ;;  %v1598_v20 = vor.u32 %v1767_v41, %v1595_v43 }
 0x1a6   :  { %1091 = vmatpush.bf16.msra.mxu1 %v1622_v34 }
 0x1a7   :  { %1136 = vadd.xlane.f32.xlu2 %v1123_v38  ;;  %773 = vmatmul.bf16.gmra.mxu1 %v685_v48  ;;  %v1768_v38 = vld [vmem:[#allocation12 + $0xc] sm:$0xf]  ;;  %v1603_v48 = vld [vmem:[#allocation12 + $0x18] sm:$0xf0] }
 0x1a8   :  { %1032 = vmatpush.bf16.msra.mxu3 %v1630_v15 }
 0x1aa   :  { %v678_v49 = vpop.f32.mrf.mxu0 }
 0x1ab   :  { %v679_v50 = vadd.f32 %v2280_v39, %v678_v49  ;;  %v1606_v49 = vor.u32 %v1768_v38, %v1603_v48 }
 0x1ac   :  { %1033 = vmatpush.bf16.msra.mxu3 %v1614_v25 }
 0x1ad   :  { %1344 = vst [vmem:[#allocation16 + $0x30] sm:$0xff] %v679_v50  ;;  %v1124_v51 = vmul.f32 %v2285_v47, %v679_v50  ;;  %1092 = vmatpush.bf16.msra.mxu1 %v1606_v49 }
 0x1af   :  { %1138 = vadd.xlane.f32.xlu0 %v1124_v51 }
 0x1b0   :  { %1034 = vmatpush.bf16.msra.mxu3 %v1598_v20 }
 0x1b2   :  { %v680_v52 = vpop.f32.mrf.mxu0 }
 0x1b3   :  { %v681_v53 = vadd.f32 %v2280_v39, %v680_v52  ;;  %v1649_v39 = vld [vmem:[#allocation12 + $0x68] sm:$0xf] }
 0x1b5   :  { %1345 = vst [vmem:[#allocation16 + $0x38] sm:$0xff] %v681_v53  ;;  %v1125_v54 = vmul.f32 %v2285_v47, %v681_v53  ;;  %v686_v55 = vpack.c.bf16 %v681_v53, %v679_v50  ;;  %v1650_v47 = vor.u32 %v1782_v3, %v1649_v39 }
 0x1b6   :  { %1380 = dma.vmem_to_hbm [thread:$0]  %s1373_s25, 1024, %s1375_s6, [#allocation17], %s2143_s8, %s2143_s8, %s2144_s2  }
 0x1b7   :  { %1140 = vadd.xlane.f32.xlu1 %v1125_v54  ;;  %778 = vmatmul.bf16.gmra.mxu1 %v686_v55 }
 0x1b8   :  { %1060 = vmatpush.bf16.msra.mxu0 %v1650_v47 }
 0x1bc   :  { %1061 = vmatpush.bf16.msra.mxu0 %v1634_v16 }
 0x1c0   :  { %1062 = vmatpush.bf16.msra.mxu0 %v1618_v31 }
 0x1c4   :  { %1063 = vmatpush.bf16.msra.mxu0 %v1602_v36 }
 0x1f2   :  { %v1127_v33 = vpop.xlane.xlu0 %1126 }
 0x1f3   :  { %v1146_v35 = vadd.f32 %v2303_v21, %v1127_v33 }
 0x1f5   :  { %v1154_v46 = vsub.f32 0.0, %v1146_v35 }
 0x1f7   :  { %v1162_v50 = vmul.f32 1.442695, %v1154_v46 }
 0x1f9   :  { %1853 = vpow2.f32 %v1162_v50 }
 0x1fa   :  { %v1129_v51 = vpop.xlane.xlu0 %1128 }
 0x1fb   :  { %v1147_v52 = vadd.f32 %v2303_v21, %v1129_v51 }
 0x1fd   :  { %v1155_v53 = vsub.f32 0.0, %v1147_v52 }
 0x1ff   :  { %v1854_v54 = vpop.eup %1853  ;;  %v1164_v55 = vmul.f32 1.442695, %v1155_v53 }
 0x200   :  { %v1178_v56 = vadd.f32 1.0, %v1854_v54 }
 0x201   :  { %1855 = vpow2.f32 %v1164_v55 }
 0x202   :  { %1857 = vrcp.f32 %v1178_v56  ;;  %v1131_v57 = vpop.xlane.xlu1 %1130  ;;  %v1195_v5 = vand.u32 2147483647, %v1178_v56  ;;  %v1197_v6 = vand.u32 2147483648, %v1178_v56  ;;  %vm1191_vm1 = vweird.f32 %v1178_v56 }
 0x203   :  { %v1148_v58 = vadd.f32 %v2303_v21, %v1131_v57 }
 0x204   :  { %v764_v59 = vpop.f32.mrf.mxu1  ;;  %v1198_v15 = vor.u32 1.1754944e-38, %v1197_v6  ;;  %vm1196_vm4 = vcmp.eq.f32.partialorder %v1195_v5, 8.507059e+37 }
 0x205   :  { %v1156_v60 = vsub.f32 0.0, %v1148_v58  ;;  %v765_v39 = vadd.f32 %v2308_v61, %v764_v59 }
 0x207   :  { %v1856_v62 = vpop.eup %1855  ;;  %v1166_v63 = vmul.f32 1.442695, %v1156_v60 }
 0x208   :  { %v1858_v0 = vpop.eup %1857  ;;  %v1179_v1 = vadd.f32 1.0, %v1856_v62 }
 0x209   :  { %v1187_v2 = vmul.f32 %v1858_v0, %v1178_v56  ;;  %1859 = vpow2.f32 %v1166_v63  ;;  %vm1192_vm0 = vweird.f32 %v1858_v0 }
 0x20a   :  { %1861 = vrcp.f32 %v1179_v1  ;;  %v1133_v3 = vpop.xlane.xlu1 %1132  ;;  %vm1193_vm3 = vmor %vm1191_vm1, %vm1192_vm0  ;;  %v1212_v29 = vand.u32 2147483648, %v1179_v1  ;;  %v1210_v31 = vand.u32 2147483647, %v1179_v1  ;;  %vm1206_vm6 = vweird.f32 %v1179_v1 }
 0x20b   :  { %v1188_v4 = vsub.f32 1.0, %v1187_v2  ;;  %v1149_v47 = vadd.f32 %v2303_v21, %v1133_v3  ;;  %1863 = vtanh.f32 %v765_v39 }
 0x20c   :  { %v766_v7 = vpop.f32.mrf.mxu1  ;;  %v1213_v40 = vor.u32 1.1754944e-38, %v1212_v29  ;;  %vm1211_vm8 = vcmp.eq.f32.partialorder %v1210_v31, 8.507059e+37 }
 0x20d   :  { %v1189_v8 = vmul.f32 %v1858_v0, %v1188_v4  ;;  %v1157_v9 = vsub.f32 0.0, %v1149_v47  ;;  %v767_v10 = vadd.f32 %v2308_v61, %v766_v7 }
 0x20f   :  { %v1860_v11 = vpop.eup %1859  ;;  %v1190_v12 = vadd.f32 %v1858_v0, %v1189_v8  ;;  %v1168_v13 = vmul.f32 1.442695, %v1157_v9  ;;  %1865 = vtanh.f32 %v767_v10 }
 0x210   :  { %v1862_v14 = vpop.eup %1861  ;;  %v1180_v16 = vadd.f32 1.0, %v1860_v11 }
 0x211   :  { %v1194_v17 = vsel %vm1193_vm3, %v1858_v0, %v1190_v12  ;;  %v1202_v18 = vmul.f32 %v1862_v14, %v1179_v1  ;;  %1867 = vpow2.f32 %v1168_v13  ;;  %v1864_v26 = vpop.eup %1863  ;;  %vm1207_vm5 = vweird.f32 %v1862_v14 }
 0x212   :  { %v1199_v19 = vsel %vm1196_vm4, %v1198_v15, %v1194_v17  ;;  %1869 = vrcp.f32 %v1180_v16  ;;  %v1135_v22 = vpop.xlane.xlu2 %1134  ;;  %vm1208_vm7 = vmor %vm1206_vm6, %vm1207_vm5  ;;  %v1225_v38 = vand.u32 2147483647, %v1180_v16  ;;  %v1227_v48 = vand.u32 2147483648, %v1180_v16 }
 0x213   :  { %1347 = vst.msk [vmem:[%s2424_s13] sm:$0xff] %vm1346_vm2, %v1199_v19  ;;  %v1203_v23 = vsub.f32 1.0, %v1202_v18  ;;  %v1150_v24 = vadd.f32 %v2303_v21, %v1135_v22  ;;  %vm1221_vm10 = vweird.f32 %v1180_v16 }
 0x214   :  { %v769_v30 = vpop.f32.mrf.mxu1  ;;  %v1228_v57 = vor.u32 1.1754944e-38, %v1227_v48  ;;  %vm1226_vm12 = vcmp.eq.f32.partialorder %v1225_v38, 8.507059e+37 }
 0x215   :  { %v1866_v27 = vpop.eup %1865  ;;  %v1204_v25 = vmul.f32 %v1862_v14, %v1203_v23  ;;  %v1158_v28 = vsub.f32 0.0, %v1150_v24  ;;  %v770_v45 = vadd.f32 %v2308_v61, %v769_v30 }
 0x216   :  { %v792_v32 = vpack.c.bf16 %v1866_v27, %v1864_v26 }
 0x217   :  { %v1868_v33 = vpop.eup %1867  ;;  %v1205_v34 = vadd.f32 %v1862_v14, %v1204_v25  ;;  %v1170_v35 = vmul.f32 1.442695, %v1158_v28 }
 0x218   :  { %v1870_v37 = vpop.eup %1869  ;;  %v2318_v41 = vadd.f32 1.0, %v1868_v33  ;;  %1006 = vmatmul.bf16.vlgmr.msra.gmra.mxu2 %v792_v32  ;;  %1035 = vmatmul.bf16.vlgmr.msra.gmra.mxu3 %v792_v32 }
 0x219   :  { %v1209_v42 = vsel %vm1208_vm7, %v1862_v14, %v1205_v34  ;;  %v1217_v43 = vmul.f32 %v1870_v37, %v1180_v16  ;;  %1871 = vpow2.f32 %v1170_v35  ;;  %1064 = vmatmul.bf16.vlgmr.msra.gmra.mxu0 %v792_v32  ;;  %1093 = vmatmul.bf16.vlgmr.msra.gmra.mxu1 %v792_v32  ;;  %vm1222_vm9 = vweird.f32 %v1870_v37 }
 0x21a   :  { %v1214_v44 = vsel %vm1211_vm8, %v1213_v40, %v1209_v42  ;;  %1873 = vrcp.f32 %v2318_v41  ;;  %v1137_v46 = vpop.xlane.xlu2 %1136  ;;  %vm1223_vm11 = vmor %vm1221_vm10, %vm1222_vm9  ;;  %v1242_v39 = vand.u32 2147483648, %v2318_v41  ;;  %v1240_v5 = vand.u32 2147483647, %v2318_v41 }
 0x21b   :  { %1348 = vst.msk [vmem:[%s2424_s13 + $0x8] sm:$0xff] %vm1346_vm2, %v1214_v44  ;;  %v1218_v20 = vsub.f32 1.0, %v1217_v43  ;;  %v1151_v36 = vadd.f32 %v2303_v21, %v1137_v46  ;;  %1875 = vtanh.f32 %v770_v45  ;;  %vm1236_vm14 = vweird.f32 %v2318_v41 }
 0x21c   :  { %v771_v49 = vpop.f32.mrf.mxu1  ;;  %v1243_v12 = vor.u32 1.1754944e-38, %v1242_v39  ;;  %vm1241_vm0 = vcmp.eq.f32.partialorder %v1240_v5, 8.507059e+37 }
 0x21d   :  { %v1219_v50 = vmul.f32 %v1870_v37, %v1218_v20  ;;  %v1159_v51 = vsub.f32 0.0, %v1151_v36  ;;  %v772_v52 = vadd.f32 %v2308_v61, %v771_v49 }
 0x21f   :  { %v1872_v53 = vpop.eup %1871  ;;  %v1220_v54 = vadd.f32 %v1870_v37, %v1219_v50  ;;  %v1172_v55 = vmul.f32 1.442695, %v1159_v51  ;;  %1877 = vtanh.f32 %v772_v52 }
 0x220   :  { %v1874_v56 = vpop.eup %1873  ;;  %v1182_v58 = vadd.f32 1.0, %v1872_v53 }
 0x221   :  { %v1224_v59 = vsel %vm1223_vm11, %v1870_v37, %v1220_v54  ;;  %v1232_v60 = vmul.f32 %v1874_v56, %v2318_v41  ;;  %1879 = vpow2.f32 %v1172_v55  ;;  %v1876_v2 = vpop.eup %1875  ;;  %vm1237_vm13 = vweird.f32 %v1874_v56 }
 0x222   :  { %v1229_v62 = vsel %vm1226_vm12, %v1228_v57, %v1224_v59  ;;  %1881 = vrcp.f32 %v1182_v58  ;;  %v1139_v63 = vpop.xlane.xlu0 %1138  ;;  %vm1238_vm15 = vmor %vm1236_vm14, %vm1237_vm13  ;;  %v1255_v23 = vand.u32 2147483647, %v1182_v58  ;;  %v1257_v24 = vand.u32 2147483648, %v1182_v58 }
 0x223   :  { %1349 = vst.msk [vmem:[%s2424_s13 + $0x10] sm:$0xff] %vm1346_vm2, %v1229_v62  ;;  %v1233_v0 = vsub.f32 1.0, %v1232_v60  ;;  %v1152_v1 = vadd.f32 %v2303_v21, %v1139_v63  ;;  %vm1251_vm3 = vweird.f32 %v1182_v58 }
 0x224   :  { %v774_v3 = vpop.f32.mrf.mxu1  ;;  %v1258_v33 = vor.u32 1.1754944e-38, %v1257_v24  ;;  %vm1256_vm5 = vcmp.eq.f32.partialorder %v1255_v23, 8.507059e+37 }
 0x225   :  { %v1878_v4 = vpop.eup %1877  ;;  %v1234_v47 = vmul.f32 %v1874_v56, %v1233_v0  ;;  %v1160_v6 = vsub.f32 0.0, %v1152_v1  ;;  %v775_v17 = vadd.f32 %v2308_v61, %v774_v3 }
 0x226   :  { %v793_v7 = vpack.c.bf16 %v1878_v4, %v1876_v2 }
 0x227   :  { %v1880_v8 = vpop.eup %1879  ;;  %v1235_v9 = vadd.f32 %v1874_v56, %v1234_v47  ;;  %v1174_v10 = vmul.f32 1.442695, %v1160_v6 }
 0x228   :  { %v1882_v11 = vpop.eup %1881  ;;  %v1183_v13 = vadd.f32 1.0, %v1880_v8  ;;  %1011 = vmatmul.bf16.gmra.mxu2 %v793_v7  ;;  %1040 = vmatmul.bf16.gmra.mxu3 %v793_v7 }
 0x229   :  { %v1239_v14 = vsel %vm1238_vm15, %v1874_v56, %v1235_v9  ;;  %v1247_v15 = vmul.f32 %v1882_v11, %v1182_v58  ;;  %1883 = vpow2.f32 %v1174_v10  ;;  %1069 = vmatmul.bf16.gmra.mxu0 %v793_v7  ;;  %1098 = vmatmul.bf16.gmra.mxu1 %v793_v7  ;;  %vm1252_vm1 = vweird.f32 %v1882_v11 }
 0x22a   :  { %v1244_v16 = vsel %vm1241_vm0, %v1243_v12, %v1239_v14  ;;  %1885 = vrcp.f32 %v1183_v13  ;;  %v1141_v18 = vpop.xlane.xlu1 %1140  ;;  %vm1253_vm4 = vmor %vm1251_vm3, %vm1252_vm1  ;;  %v1272_v42 = vand.u32 2147483648, %v1183_v13  ;;  %v1270_v46 = vand.u32 2147483647, %v1183_v13  ;;  %v828_v12 = vld [vmem:[#allocation14] sm:$0xf] }
 0x22b   :  { %1350 = vst.msk [vmem:[%s2424_s13 + $0x18] sm:$0xff] %vm1346_vm2, %v1244_v16  ;;  %v1248_v19 = vsub.f32 1.0, %v1247_v15  ;;  %v1153_v22 = vadd.f32 %v2303_v21, %v1141_v18  ;;  %1887 = vtanh.f32 %v775_v17  ;;  %vm1266_vm7 = vweird.f32 %v1183_v13 }
 0x22c   :  { %v776_v26 = vpop.f32.mrf.mxu1  ;;  %v1273_v49 = vor.u32 1.1754944e-38, %v1272_v42  ;;  %vm1271_vm9 = vcmp.eq.f32.partialorder %v1270_v46, 8.507059e+37  ;;  %v2367_v14 = vperm.slane %v828_v12, 3 }
 0x22d   :  { %v1249_v29 = vmul.f32 %v1882_v11, %v1248_v19  ;;  %v1161_v30 = vsub.f32 0.0, %v1153_v22  ;;  %v777_v27 = vadd.f32 %v2308_v61, %v776_v26  ;;  %v2371_v19 = vperm.slane %v828_v12, 0 }
 0x22e   :  { %v2373_v22 = vperm.slane %v828_v12, 1 }
 0x22f   :  { %v1884_v25 = vpop.eup %1883  ;;  %v1250_v31 = vadd.f32 %v1882_v11, %v1249_v29  ;;  %v1176_v28 = vmul.f32 1.442695, %v1161_v30  ;;  %1889 = vtanh.f32 %v777_v27 }
 0x230   :  { %v1886_v32 = vpop.eup %1885  ;;  %v1184_v34 = vadd.f32 1.0, %v1884_v25 }
 0x231   :  { %v1254_v35 = vsel %vm1253_vm4, %v1882_v11, %v1250_v31  ;;  %v1262_v21 = vmul.f32 %v1886_v32, %v1183_v13  ;;  %1891 = vpow2.f32 %v1176_v28  ;;  %v1888_v41 = vpop.eup %1887  ;;  %vm1267_vm6 = vweird.f32 %v1886_v32 }
 0x232   :  { %v1259_v37 = vsel %vm1256_vm5, %v1258_v33, %v1254_v35  ;;  %1893 = vrcp.f32 %v1184_v34  ;;  %vm1268_vm8 = vmor %vm1266_vm7, %vm1267_vm6  ;;  %v1287_v56 = vand.u32 2147483648, %v1184_v34  ;;  %v1285_v59 = vand.u32 2147483647, %v1184_v34 }
 0x233   :  { %1351 = vst.msk [vmem:[%s2424_s13 + $0x20] sm:$0xff] %vm1346_vm2, %v1259_v37  ;;  %v1263_v40 = vsub.f32 1.0, %v1262_v21  ;;  %vm1281_vm11 = vweird.f32 %v1184_v34  ;;  %v2365_v13 = vperm.slane %v828_v12, 2 }
 0x234   :  { %v779_v43 = vpop.f32.mrf.mxu1  ;;  %v1288_v0 = vor.u32 1.1754944e-38, %v1287_v56  ;;  %vm1286_vm13 = vcmp.eq.f32.partialorder %v1285_v59, 8.507059e+37 }
 0x235   :  { %v1890_v44 = vpop.eup %1889  ;;  %v1264_v45 = vmul.f32 %v1886_v32, %v1263_v40  ;;  %v780_v54 = vadd.f32 %v2308_v61, %v779_v43 }
 0x236   :  { %v794_v20 = vpack.c.bf16 %v1890_v44, %v1888_v41 }
 0x237   :  { %v1892_v36 = vpop.eup %1891  ;;  %v1265_v38 = vadd.f32 %v1886_v32, %v1264_v45 }
 0x238   :  { %v1894_v48 = vpop.eup %1893  ;;  %v1185_v50 = vadd.f32 1.0, %v1892_v36  ;;  %1016 = vmatmul.bf16.gmra.mxu2 %v794_v20  ;;  %1045 = vmatmul.bf16.gmra.mxu3 %v794_v20 }
 0x239   :  { %v1269_v51 = vsel %vm1268_vm8, %v1886_v32, %v1265_v38  ;;  %v1277_v52 = vmul.f32 %v1894_v48, %v1184_v34  ;;  %1074 = vmatmul.bf16.gmra.mxu0 %v794_v20  ;;  %1103 = vmatmul.bf16.gmra.mxu1 %v794_v20  ;;  %vm1282_vm10 = vweird.f32 %v1894_v48 }
 0x23a   :  { %v1274_v53 = vsel %vm1271_vm9, %v1273_v49, %v1269_v51  ;;  %1895 = vrcp.f32 %v1185_v50  ;;  %vm1283_vm12 = vmor %vm1281_vm11, %vm1282_vm10  ;;  %v1302_v47 = vand.u32 2147483648, %v1185_v50  ;;  %v1300_v6 = vand.u32 2147483647, %v1185_v50 }
 0x23b   :  { %1352 = vst.msk [vmem:[%s2424_s13 + $0x28] sm:$0xff] %vm1346_vm2, %v1274_v53  ;;  %v1278_v55 = vsub.f32 1.0, %v1277_v52  ;;  %1897 = vtanh.f32 %v780_v54  ;;  %vm1296_vm15 = vweird.f32 %v1185_v50 }
 0x23c   :  { %v781_v57 = vpop.f32.mrf.mxu1  ;;  %v1303_v9 = vor.u32 1.1754944e-38, %v1302_v47  ;;  %vm1301_vm1 = vcmp.eq.f32.partialorder %v1300_v6, 8.507059e+37 }
 0x23d   :  { %v1279_v58 = vmul.f32 %v1894_v48, %v1278_v55  ;;  %v782_v60 = vadd.f32 %v2308_v61, %v781_v57 }
 0x23f   :  { %v1280_v62 = vadd.f32 %v1894_v48, %v1279_v58  ;;  %1899 = vtanh.f32 %v782_v60 }
 0x240   :  { %v1896_v63 = vpop.eup %1895 }
 0x241   :  { %v1284_v1 = vsel %vm1283_vm12, %v1894_v48, %v1280_v62  ;;  %v1292_v2 = vmul.f32 %v1896_v63, %v1185_v50  ;;  %v1898_v4 = vpop.eup %1897  ;;  %vm1297_vm14 = vweird.f32 %v1896_v63 }
 0x242   :  { %v1289_v39 = vsel %vm1286_vm13, %v1288_v0, %v1284_v1  ;;  %vm1298_vm0 = vmor %vm1296_vm15, %vm1297_vm14 }
 0x243   :  { %1353 = vst.msk [vmem:[%s2424_s13 + $0x30] sm:$0xff] %vm1346_vm2, %v1289_v39  ;;  %v1293_v3 = vsub.f32 1.0, %v1292_v2 }
 0x245   :  { %v1900_v61 = vpop.eup %1899  ;;  %v1294_v5 = vmul.f32 %v1896_v63, %v1293_v3 }
 0x246   :  { %v795_v7 = vpack.c.bf16 %v1900_v61, %v1898_v4 }
 0x247   :  { %v1295_v8 = vadd.f32 %v1896_v63, %v1294_v5 }
 0x248   :  { %1021 = vmatmul.bf16.gmra.mxu2 %v795_v7  ;;  %1050 = vmatmul.bf16.gmra.mxu3 %v795_v7 }
 0x249   :  { %v1299_v10 = vsel %vm1298_vm0, %v1896_v63, %v1295_v8  ;;  %1079 = vmatmul.bf16.gmra.mxu0 %v795_v7  ;;  %1108 = vmatmul.bf16.gmra.mxu1 %v795_v7 }
 0x24a   :  { %v1304_v11 = vsel %vm1301_vm1, %v1303_v9, %v1299_v10 }
 0x24b   :  { %1354 = vst.msk [vmem:[%s2424_s13 + $0x38] sm:$0xff] %vm1346_vm2, %v1304_v11  ;;  %s1359_s13 = sshll.u32 %s2145_s12, 4  ;;  %s1360_s13 = int_to_ptr.vmem [resolvable:$true] %s1359_s13 }
 0x296   :  { %v1065_v15 = vpop.f32.mrf.mxu0  ;;  %v1094_v16 = vpop.f32.mrf.mxu1 }
 0x297   :  { %v1066_v17 = vadd.f32 %v1065_v15, %v2365_v13  ;;  %v1095_v18 = vadd.f32 %v1094_v16, %v2367_v14 }
 0x299   :  { %1308 = vst [vmem:[#allocation15 + $0x10] sm:$0xff] %v1066_v17 }
 0x29a   :  { %1309 = vst [vmem:[#allocation15 + $0x18] sm:$0xff] %v1095_v18 }
 0x29b   :  { %v1007_v23 = vpop.f32.mrf.mxu2  ;;  %v1036_v24 = vpop.f32.mrf.mxu3 }
 0x29c   :  { %v1008_v26 = vadd.f32 %v1007_v23, %v2371_v19  ;;  %v1037_v29 = vadd.f32 %v1036_v24, %v2373_v22 }
 0x29e   :  { %1306 = vst [vmem:[#allocation15] sm:$0xff] %v1008_v26  ;;  %v1067_v30 = vpop.f32.mrf.mxu0  ;;  %v1096_v27 = vpop.f32.mrf.mxu1 }
 0x29f   :  { %1307 = vst [vmem:[#allocation15 + $0x8] sm:$0xff] %v1037_v29  ;;  %v1068_v25 = vadd.f32 %v1067_v30, %v2365_v13  ;;  %v1097_v31 = vadd.f32 %v1096_v27, %v2367_v14 }
 0x2a1   :  { %1312 = vst [vmem:[#allocation15 + $0x30] sm:$0xff] %v1068_v25 }
 0x2a2   :  { %1313 = vst [vmem:[#allocation15 + $0x38] sm:$0xff] %v1097_v31 }
 0x2a3   :  { %v1009_v28 = vpop.f32.mrf.mxu2  ;;  %v1038_v32 = vpop.f32.mrf.mxu3 }
 0x2a4   :  { %v1010_v33 = vadd.f32 %v1009_v28, %v2371_v19  ;;  %v1039_v34 = vadd.f32 %v1038_v32, %v2373_v22 }
 0x2a6   :  { %1310 = vst [vmem:[#allocation15 + $0x20] sm:$0xff] %v1010_v33  ;;  %v1070_v35 = vpop.f32.mrf.mxu0  ;;  %v1099_v21 = vpop.f32.mrf.mxu1 }
 0x2a7   :  { %1311 = vst [vmem:[#allocation15 + $0x28] sm:$0xff] %v1039_v34  ;;  %v1071_v37 = vadd.f32 %v1070_v35, %v2365_v13  ;;  %v1100_v40 = vadd.f32 %v1099_v21, %v2367_v14 }
 0x2a9   :  { %1316 = vst [vmem:[#allocation15 + $0x50] sm:$0xff] %v1071_v37 }
 0x2aa   :  { %1317 = vst [vmem:[#allocation15 + $0x58] sm:$0xff] %v1100_v40 }
 0x2ab   :  { %v1012_v41 = vpop.f32.mrf.mxu2  ;;  %v1041_v42 = vpop.f32.mrf.mxu3 }
 0x2ac   :  { %v1013_v43 = vadd.f32 %v1012_v41, %v2371_v19  ;;  %v1042_v44 = vadd.f32 %v1041_v42, %v2373_v22 }
 0x2ae   :  { %1314 = vst [vmem:[#allocation15 + $0x40] sm:$0xff] %v1013_v43  ;;  %v1072_v45 = vpop.f32.mrf.mxu0  ;;  %v1101_v46 = vpop.f32.mrf.mxu1 }
 0x2af   :  { %1315 = vst [vmem:[#allocation15 + $0x48] sm:$0xff] %v1042_v44  ;;  %v1073_v20 = vadd.f32 %v1072_v45, %v2365_v13  ;;  %v1102_v36 = vadd.f32 %v1101_v46, %v2367_v14 }
 0x2b1   :  { %1320 = vst [vmem:[#allocation15 + $0x70] sm:$0xff] %v1073_v20 }
 0x2b2   :  { %1321 = vst [vmem:[#allocation15 + $0x78] sm:$0xff] %v1102_v36 }
 0x2b3   :  { %v1014_v38 = vpop.f32.mrf.mxu2  ;;  %v1043_v48 = vpop.f32.mrf.mxu3 }
 0x2b4   :  { %v1015_v49 = vadd.f32 %v1014_v38, %v2371_v19  ;;  %v1044_v50 = vadd.f32 %v1043_v48, %v2373_v22 }
 0x2b6   :  { %1318 = vst [vmem:[#allocation15 + $0x60] sm:$0xff] %v1015_v49  ;;  %v1075_v51 = vpop.f32.mrf.mxu0  ;;  %v1104_v52 = vpop.f32.mrf.mxu1 }
 0x2b7   :  { %1319 = vst [vmem:[#allocation15 + $0x68] sm:$0xff] %v1044_v50  ;;  %v1076_v53 = vadd.f32 %v1075_v51, %v2365_v13  ;;  %v1105_v54 = vadd.f32 %v1104_v52, %v2367_v14 }
 0x2b9   :  { %1324 = vst [vmem:[#allocation15 + $0x90] sm:$0xff] %v1076_v53 }
 0x2ba   :  { %1325 = vst [vmem:[#allocation15 + $0x98] sm:$0xff] %v1105_v54 }
 0x2bb   :  { %v1017_v55 = vpop.f32.mrf.mxu2  ;;  %v1046_v56 = vpop.f32.mrf.mxu3 }
 0x2bc   :  { %v1018_v57 = vadd.f32 %v1017_v55, %v2371_v19  ;;  %v1047_v58 = vadd.f32 %v1046_v56, %v2373_v22 }
 0x2be   :  { %1322 = vst [vmem:[#allocation15 + $0x80] sm:$0xff] %v1018_v57  ;;  %v1077_v59 = vpop.f32.mrf.mxu0  ;;  %v1106_v60 = vpop.f32.mrf.mxu1 }
 0x2bf   :  { %1323 = vst [vmem:[#allocation15 + $0x88] sm:$0xff] %v1047_v58  ;;  %v1078_v62 = vadd.f32 %v1077_v59, %v2365_v13  ;;  %v1107_v63 = vadd.f32 %v1106_v60, %v2367_v14 }
 0x2c1   :  { %1328 = vst [vmem:[#allocation15 + $0xb0] sm:$0xff] %v1078_v62 }
 0x2c2   :  { %1329 = vst [vmem:[#allocation15 + $0xb8] sm:$0xff] %v1107_v63 }
 0x2c3   :  { %v1019_v0 = vpop.f32.mrf.mxu2  ;;  %v1048_v1 = vpop.f32.mrf.mxu3 }
 0x2c4   :  { %v1020_v2 = vadd.f32 %v1019_v0, %v2371_v19  ;;  %v1049_v39 = vadd.f32 %v1048_v1, %v2373_v22 }
 0x2c6   :  { %1326 = vst [vmem:[#allocation15 + $0xa0] sm:$0xff] %v1020_v2  ;;  %v1080_v3 = vpop.f32.mrf.mxu0  ;;  %v1109_v4 = vpop.f32.mrf.mxu1 }
 0x2c7   :  { %1327 = vst [vmem:[#allocation15 + $0xa8] sm:$0xff] %v1049_v39  ;;  %v1081_v47 = vadd.f32 %v1080_v3, %v2365_v13  ;;  %v1110_v61 = vadd.f32 %v1109_v4, %v2367_v14 }
 0x2c9   :  { %1332 = vst [vmem:[#allocation15 + $0xd0] sm:$0xff] %v1081_v47 }
 0x2ca   :  { %1333 = vst [vmem:[#allocation15 + $0xd8] sm:$0xff] %v1110_v61 }
 0x2cb   :  { %v1022_v5 = vpop.f32.mrf.mxu2  ;;  %v1051_v6 = vpop.f32.mrf.mxu3 }
 0x2cc   :  { %v1023_v7 = vadd.f32 %v1022_v5, %v2371_v19  ;;  %v1052_v8 = vadd.f32 %v1051_v6, %v2373_v22 }
 0x2ce   :  { %1330 = vst [vmem:[#allocation15 + $0xc0] sm:$0xff] %v1023_v7  ;;  %v1082_v9 = vpop.f32.mrf.mxu0  ;;  %v1111_v10 = vpop.f32.mrf.mxu1 }
 0x2cf   :  { %1331 = vst [vmem:[#allocation15 + $0xc8] sm:$0xff] %v1052_v8  ;;  %v1083_v11 = vadd.f32 %v1082_v9, %v2365_v13  ;;  %v1112_v12 = vadd.f32 %v1111_v10, %v2367_v14 }
 0x2d1   :  { %1336 = vst [vmem:[#allocation15 + $0xf0] sm:$0xff] %v1083_v11 }
 0x2d2   :  { %1337 = vst [vmem:[#allocation15 + $0xf8] sm:$0xff] %v1112_v12 }
 0x2d3   :  { %v1024_v15 = vpop.f32.mrf.mxu2  ;;  %v1053_v16 = vpop.f32.mrf.mxu3 }
 0x2d4   :  { %v1025_v17 = vadd.f32 %v1024_v15, %v2371_v19  ;;  %v1054_v18 = vadd.f32 %v1053_v16, %v2373_v22 }
 0x2d6   :  { %1334 = vst [vmem:[#allocation15 + $0xe0] sm:$0xff] %v1025_v17 }
 0x2d7   :  { %1335 = vst [vmem:[#allocation15 + $0xe8] sm:$0xff] %v1054_v18 }
 0x2d8   :  { %1367 = dma.vmem_to_hbm [thread:$0]  %s1360_s13, 4096, %s1362_s27, [#allocation5], %s2137_s7, %s2137_s7, %s2138_s14  }
 0x2d9   :  { %2125 = dma.done.wait [#allocation5], 4096  }
 0x2da   :  { %2126 = vsyncadd [#allocation5], 4294963200 }
 0x2db   :  { %2127 = dma.done.wait [#allocation17], 1024  }
 0x2dc   :  { %2128 = vsyncadd [#allocation17], 4294966272 }
 0x2dd   :  { %1393 = vsyncpa [#allocation4], 1 }
 0x2de   :  { %1394 = vsyncpa [#allocation7], 1 }
 0x2df   :  { %1395 = vsyncpa [#allocation10], 1 }
 0x2e0   :  { %1396 = vsyncpa [#allocation13], 1 }
 0x2e1   :  { %1397 = vsyncpa [#allocation5], 1 }
 0x2e2   :  { %1398 = vsyncpa [#allocation17], 1 }

</bundles_post_ra>
